<compile_context>
chip_gen: v6e
topology: v6e:2x2x1
jax: 0.10.0
libtpu: 0.0.40
codegen_flags: <defaults>
</compile_context>

<pallas_src>
import functools
import math

import numpy as np

import jax
import jax.numpy as jnp
from jax.experimental import pallas as pl
from jax.experimental.pallas import tpu as pltpu

WIN = 11
NSIG = 0.1
PAD = (WIN - 1) // 2


def _gkern1d(kernlen: int = WIN, nsig: float = NSIG) -> np.ndarray:
    """1D Gaussian kernel, identical to the scipy.stats.norm.cdf-based construction."""
    x = np.linspace(-nsig, nsig, kernlen + 1)
    cdf = np.array([0.5 * (1.0 + math.erf(v / math.sqrt(2.0))) for v in x],
                   dtype=np.float64)
    k1d = np.diff(cdf)
    return (k1d / k1d.sum()).astype(np.float32)


K1D = _gkern1d()  # (11,), deterministic "buffer" of the module


def _toeplitz_same(n: int) -> np.ndarray:
    """Banded matrix M with M[i, j] = K1D[j - i + PAD]:  y = M @ x  ==  'same' cross-corr."""
    m = np.zeros((n, n), dtype=np.float64)
    k = K1D.astype(np.float64)
    for i in range(n):
        for t in range(WIN):
            j = i + t - PAD
            if 0 <= j < n:
                m[i, j] = k[t]
    return m


@functools.lru_cache(maxsize=None)
def _conv_matrices(D: int, H: int, W: int):
    md = _toeplitz_same(D)
    mh = _toeplitz_same(H)
    mw = _toeplitz_same(W)
    # Right-multiply matrix for the fused H,W pass on the (D, H*W) flattening:
    #   (X @ R)[d, h*W + w] = sum_{h', w'} X[d, h'*W + w'] * M_H[h, h'] * M_W[w, w']
    r = np.kron(mh.T, mw.T)
    return md.astype(np.float32), r.astype(np.float32)


def _gauss3d_kernel(x_ref, md_ref, r_ref, o_ref):
    # x_ref : (1, D, H*W) input volume block (H*W flattened onto lanes)
    # md_ref: (D, D)      banded Toeplitz for the D-axis conv (implicit zero pad)
    # r_ref : (H*W, H*W)  kron(M_H, M_W)^T -- fused H,W conv (implicit zero pad)
    # o_ref : (1, D, H*W) output block
    x = x_ref[0].astype(jnp.float32)                      # cast once
    y = jnp.dot(md_ref[...], x,
                preferred_element_type=jnp.float32,
                precision=jax.lax.Precision.HIGHEST)      # D-axis conv (MXU)
    y = jnp.dot(y, r_ref[...],
                preferred_element_type=jnp.float32,
                precision=jax.lax.Precision.HIGHEST)      # fused H,W conv (MXU)
    o_ref[0] = y.astype(o_ref.dtype)


def gaussian_kernel_forward(x: jax.Array) -> jax.Array:
    """Equivalent of GaussianKernel.forward: F.conv3d(x, kernel, padding=(win-1)//2).

    x: (N, 1, D, H, W) float32  ->  (N, 1, D, H, W) float32
    """
    N, C, D, H, W = x.shape
    assert C == 1, "GaussianKernel's conv3d weight has in_channels = out_channels = 1"
    HW = H * W
    # Guard: the fused H*W Toeplitz matrix is (H*W, H*W) f32.
    assert HW <= 1024, "TODO(synk): split H/W passes + tile D for large volumes"

    md_np, r_np = _conv_matrices(D, H, W)
    md = jnp.asarray(md_np)
    r = jnp.asarray(r_np)

    # Free metadata reshape in HBM; presents a lane-dense (H*W) last dim, no jnp.pad.
    x2 = x.reshape(N, D, HW)

    out = pl.pallas_call(
        _gauss3d_kernel,
        out_shape=jax.ShapeDtypeStruct((N, D, HW), x.dtype),
        grid=(N,),
        in_specs=[
            pl.BlockSpec((1, D, HW), lambda n: (n, 0, 0)),
            pl.BlockSpec((D, D), lambda n: (0, 0)),     # resident across grid steps
            pl.BlockSpec((HW, HW), lambda n: (0, 0)),   # resident across grid steps
        ],
        out_specs=pl.BlockSpec((1, D, HW), lambda n: (n, 0, 0)),
        compiler_params=pltpu.CompilerParams(dimension_semantics=("parallel",)),
    )(x2, md, r)

    return out.reshape(N, 1, D, H, W)


def _reference_conv3d(x: jax.Array) -> jax.Array:
    """Pure-JAX reference matching F.conv3d with the full (1,1,11,11,11) kernel."""
    k3d = (K1D[:, None, None] * K1D[None, :, None] * K1D[None, None, :]).astype(np.float32)
    w = jnp.asarray(k3d)[None, None]  # (O=1, I=1, 11, 11, 11)
    return jax.lax.conv_general_dilated(
        x, w, window_strides=(1, 1, 1),
        padding=[(PAD, PAD)] * 3,
        dimension_numbers=("NCDHW", "OIDHW", "NCDHW"),
        precision=jax.lax.Precision.HIGHEST)


if __name__ == "__main__":
    key = jax.random.PRNGKey(0)
    # Input consistent with GaussianKernel.forward: NCDHW, single channel.
    x = jax.random.normal(key, (2, 1, 16, 16, 16), dtype=jnp.float32)

    y = gaussian_kernel_forward(x)
    y = jax.block_until_ready(y)

    y_ref = jax.block_until_ready(_reference_conv3d(x))
    assert y.shape == x.shape and y.dtype == x.dtype
    np.testing.assert_allclose(np.asarray(y), np.asarray(y_ref), rtol=1e-5, atol=1e-5)

    print("KERNEL_OK")
</pallas_src>

<mosaic_0001>
module attributes {stable_mosaic.version = 11 : i64} {
  func.func @_gauss3d_kernel(%arg0: i32, %arg1: memref<1x16x256xf32, #tpu.memory_space<vmem>>, %arg2: memref<16x16xf32, #tpu.memory_space<vmem>>, %arg3: memref<256x256xf32, #tpu.memory_space<vmem>>, %arg4: memref<1x16x256xf32, #tpu.memory_space<vmem>>) attributes {dimension_semantics = [#tpu.dimension_semantics<parallel>], iteration_bounds = array<i64: 2>, scalar_prefetch = 0 : i64, scratch_operands = 0 : i64, tpu.core_type = #tpu.core_type<tc>, window_params = [{transform_indices = @transform_0, window_bounds = array<i64: 1, 16, 256>}, {pipeline_mode = #tpu.pipeline_mode<synchronous>, transform_indices = @transform_1, window_bounds = array<i64: 16, 16>}, {pipeline_mode = #tpu.pipeline_mode<synchronous>, transform_indices = @transform_2, window_bounds = array<i64: 256, 256>}, {transform_indices = @transform_3, window_bounds = array<i64: 1, 16, 256>}]} {
    %c0 = arith.constant 0 : index
    %c0_0 = arith.constant 0 : index
    %c0_1 = arith.constant 0 : index
    %0 = vector.load %arg1[%c0, %c0_0, %c0_1] : memref<1x16x256xf32, #tpu.memory_space<vmem>>, vector<1x16x256xf32>
    %1 = vector.shape_cast %0 : vector<1x16x256xf32> to vector<16x256xf32>
    %c0_2 = arith.constant 0 : index
    %c0_3 = arith.constant 0 : index
    %2 = vector.load %arg2[%c0_2, %c0_3] : memref<16x16xf32, #tpu.memory_space<vmem>>, vector<16x16xf32>
    %cst = arith.constant dense<0.000000e+00> : vector<16x256xf32>
    %3 = tpu.matmul %2, %1, %cst {dimension_numbers = #tpu.dot_dimension_numbers<[1], [0], [0], [1], [0, 0, 1, 1], [], []>, precision = #tpu.contract_precision<fp32>} : vector<16x16xf32>, vector<16x256xf32>, vector<16x256xf32> -> vector<16x256xf32>
    %c0_4 = arith.constant 0 : index
    %c0_5 = arith.constant 0 : index
    %4 = vector.load %arg3[%c0_4, %c0_5] : memref<256x256xf32, #tpu.memory_space<vmem>>, vector<256x256xf32>
    %cst_6 = arith.constant dense<0.000000e+00> : vector<16x256xf32>
    %5 = tpu.matmul %3, %4, %cst_6 {dimension_numbers = #tpu.dot_dimension_numbers<[1], [0], [0], [1], [0, 0, 1, 1], [], []>, precision = #tpu.contract_precision<fp32>} : vector<16x256xf32>, vector<256x256xf32>, vector<16x256xf32> -> vector<16x256xf32>
    %c0_7 = arith.constant 0 : index
    %c0_8 = arith.constant 0 : index
    %c0_9 = arith.constant 0 : index
    %6 = vector.load %arg4[%c0_7, %c0_8, %c0_9] : memref<1x16x256xf32, #tpu.memory_space<vmem>>, vector<1x16x256xf32>
    %7 = vector.shape_cast %6 : vector<1x16x256xf32> to vector<16x256xf32>
    %8 = vector.shape_cast %5 : vector<16x256xf32> to vector<1x16x256xf32>
    tpu.vector_store %arg4[%c0_7, %c0_8, %c0_9], %8 {strides = array<i32>} : memref<1x16x256xf32, #tpu.memory_space<vmem>>, vector<1x16x256xf32>,
    return
  }
  func.func @transform_0(%arg0: i32) -> (i32, i32, i32) {
    %c0_i32 = arith.constant 0 : i32
    %c0_i32_0 = arith.constant 0 : i32
    %c0_i32_1 = arith.constant 0 : i32
    return %arg0, %c0_i32, %c0_i32_0 : i32, i32, i32
  }
  func.func @transform_1(%arg0: i32) -> (i32, i32) {
    %c0_i32 = arith.constant 0 : i32
    %c0_i32_0 = arith.constant 0 : i32
    %c0_i32_1 = arith.constant 0 : i32
    return %c0_i32, %c0_i32_0 : i32, i32
  }
  func.func @transform_2(%arg0: i32) -> (i32, i32) {
    %c0_i32 = arith.constant 0 : i32
    %c0_i32_0 = arith.constant 0 : i32
    %c0_i32_1 = arith.constant 0 : i32
    return %c0_i32, %c0_i32_0 : i32, i32
  }
  func.func @transform_3(%arg0: i32) -> (i32, i32, i32) {
    %c0_i32 = arith.constant 0 : i32
    %c0_i32_0 = arith.constant 0 : i32
    %c0_i32_1 = arith.constant 0 : i32
    return %arg0, %c0_i32, %c0_i32_0 : i32, i32, i32
  }
}

</mosaic_0001>

<bundles_post_ra>
// kernel: tpu_custom_call.1
= control target key start
LH: loop header
LB: loop body
LE: loop exit
PB: predicated region body
PF: predicated region fallthrough
CT: control target
= control target key end

     0   :  { %8 = vsyncpa [#allocation3], 0  ;;  %s3954_s0 = inlined_call_operand.hbm [shape: f32[2,16,256], index: 0, kind: input, shape index: {}]   ;;  %s3955_s1 = inlined_call_operand.hbm [shape: f32[16,16], index: 1, kind: input, shape index: {}]   ;;  %s3956_s2 = inlined_call_operand.hbm [shape: f32[256,256], index: 2, kind: input, shape index: {}]   ;;  %s3957_s3 = inlined_call_operand.hbm [shape: f32[2,16,256], index: 3, kind: output, shape index: {}]  }
   0x1   :  { %10 = vsyncpa [#allocation3 + $0x1], 0 }
   0x2   :  { %11 = vsyncpa [#allocation6], 0 }
   0x3   :  { %12 = vsyncpa [#allocation4], 0 }
   0x4   :  { %14 = vsyncpa [#allocation4 + $0x1], 0  ;;  %s2566_s12 = smov 0   ;;  %s2568_s13 = smov 0  }
   0x5   :  { %s2570_s14 = smov 0   ;;  %s2572_s15 = smov 0  }
   0x6 LB: > { %s2587_s16 = sadd.s32 4294967295, %s2533_s15   ;;  %s2291_s17 = sadd.s32 4294967294, %s2533_s15   ;;  %s2533_s15 = sphi %s2572_s15, %s4580_s15   ;;  %s2529_s14 = sphi %s2570_s14, %s4579_s14   ;;  %s2525_s13 = sphi %s2568_s13, %s4578_s13   ;;  %s2521_s12 = sphi %s2566_s12, %s4577_s12  }
   0x7   : > { %p40_p0 = scmp.ne.s32.totalorder %s2525_s13, %s2521_s12  ;;  %p3958_p1 = scmp.eq.s32.totalorder %s2587_s16, 0 }
   0x8   : > { %p112_p3 = scmp.eq.s32.totalorder %s2291_s17, 1  ;;  %p2292_p5 = scmp.ge.s32.totalorder %s2533_s15, 1 }
   0x9   : > { %p2596_p4 = por %p3958_p1, %p40_p0  ;;  %p119_p7 = scmp.lt.s32.totalorder %s2533_s15, 3 }
   0xa   : > { %p2601_p6 = por %p112_p3, %p40_p0  ;;  %s2535_s21 = smov [#allocation5]  }
   0xb   : > { %s4201_s18 = scalar_select %p2596_p4, 1, 0 }
   0xc   : > { %s4202_s19 = scalar_select %p2601_p6, 1, 0 }
   0xd   : > { %p2606_p8 = pnand %p2292_p5, %p119_p7  ;;  %s131_s22 = sshll.u32 %s2535_s21, 4  ;;  %s132_s22 = int_to_ptr.vmem [resolvable:$true] %s131_s22 }
   0xe   : > { %s2536_s24 = smov [#allocation7]   ;;  %s2396_s26 = scalar_lea.vmem %s132_s22, 256 }
   0xf   : > { %s4203_s20 = scalar_select %p2606_p8, 1, 0 }
  0x10   : > { %p2323_p9 = pneg %p2606_p8  ;;  %s144_s25 = sshll.u32 %s2536_s24, 4  ;;  %s145_s25 = int_to_ptr.vmem [resolvable:$true] %s144_s25 }
  0x11   : > { %p2397_p13 = scmp.ne.s32.totalorder %s132_s22, %s2396_s26  ;;  %p2404_p5 = scmp.lt.s32.totalorder %s132_s22, %s132_s22 }
  0x12   : > { %p2615_p11 = pnand %p2323_p9, %p3958_p1  ;;  %p2405_p7 = scmp.lt.s32.totalorder %s2396_s26, %s2396_s26 }
  0x14   : > { %p2387_p12 = pneg %p2615_p11  ;;  %p2406_p10 = por %p2405_p7, %p2404_p5 }
  0x16   : > { %p2399_p0 = pnand %p2397_p13, %p2387_p12 }
  0x18   : > { %p2400_p3 = pneg %p2399_p0 }
  0x1a   : > { %p2407_p9 = pnand %p2406_p10, %p2400_p3 }
  0x1c   : > { %2410 = shalt.err (!%p2407_p9)
}
  0x1d   : > { %s2537_s27 = smov 128   ;;  %s2538_s28 = smov 8  }
  0x1e   : > { %2326 = dma.hbm_to_vmem [thread:$0]  (!%p2615_p11), %s3955_s1, 256, %s132_s22, [#allocation6], %s2537_s27, %s2537_s27, %s2538_s28  }
  0x1f   : > { %s2422_s4 = scalar_lea.vmem %s145_s25, 8192  ;;  %p2430_p2 = scmp.lt.s32.totalorder %s145_s25, %s145_s25 }
  0x20   : > { %p2423_p1 = scmp.ne.s32.totalorder %s145_s25, %s2422_s4  ;;  %p2431_p6 = scmp.lt.s32.totalorder %s2422_s4, %s2422_s4 }
  0x22   : > { %p2425_p13 = pnand %p2423_p1, %p2387_p12  ;;  %p2432_p5 = por %p2431_p6, %p2430_p2 }
  0x24   : > { %p2426_p0 = pneg %p2425_p13 }
  0x26   : > { %p2433_p10 = pnand %p2432_p5, %p2426_p0 }
  0x28   : > { %2436 = shalt.err (!%p2433_p10)
}
  0x29   : > { %s2539_s5 = smov 256   ;;  %s2540_s6 = smov 16  }
  0x2a   : > { %2329 = dma.hbm_to_vmem [thread:$0]  (!%p2615_p11), %s3956_s2, 8192, %s145_s25, [#allocation6], %s2539_s5, %s2539_s5, %s2540_s6  }
  0x2b   : > { %s2641_s9 = sadd.s32 1, %s2533_s15   ;;  %s27_s11 = sadd.s32 1, %s2529_s14 }
  0x2c   : > { %s24_s10 = ssub.s32 %s2533_s15, %s2641_s9  ;;  %p34_p2 = scmp.ne.s32.totalorder %s2529_s14, %s2525_s13 }
  0x2d   : > { %p25_p1 = scmp.eq.s32.totalorder %s24_s10, 0  ;;  %p35_p6 = scmp.eq.s32.totalorder %s2533_s15, 0 }
  0x2e   : > { %p4205_p3 = scmp.eq.s32.totalorder %s2587_s16, 1  ;;  %p2340_p9 = scmp.lt.s32.totalorder %s2533_s15, 2 }
  0x2f   : > { %s2650_s17 = scalar_select %p25_p1, %s2529_s14, %s27_s11  }
  0x30   : > { %p36_p12 = por %p35_p6, %p34_p2  ;;  %p2654_p7 = por %p4205_p3, %p34_p2 }
  0x31   : > { %s158_s22 = sand.u32 1, %s2529_s14   ;;  %s2309_s24 = sshll.u32 %s2533_s15, 9 }
  0x32   : > { %s4206_s21 = scalar_select %p2654_p7, 1, 0 }
  0x33   : > { %s2296_s23 = sshll.u32 %s158_s22, 5  ;;  %s2664_s27 = scalar_lea.hbm %s3954_s0, %s2309_s24 }
  0x34   : > { %s162_s28 = scalar_lea.vmem [#allocation2], %s2296_s23  ;;  %p2668_p11 = pnand %p2340_p9, %p36_p12 }
  0x35   : > { %s169_s29 = sshll.u32 %s162_s28, 4  ;;  %s2672_s4 = scalar_lea.sflag [#allocation3], %s158_s22  ;;  %s2666_s29 = int_to_ptr.vmem [resolvable:$true] %s169_s29 }
  0x36   : > { %s2437_s7 = scalar_lea.hbm %s2664_s27, 512  ;;  %p2439_p0 = pneg %p2668_p11 }
  0x37   : > { %p2438_p13 = scmp.ne.s32.totalorder %s2664_s27, %s2437_s7  ;;  %s2442_s11 = scalar_lea.hbm %s3954_s0, 1024 }
  0x38   : > { %p2443_p1 = scmp.lt.s32.totalorder %s2664_s27, %s3954_s0  ;;  %p2444_p2 = scmp.lt.s32.totalorder %s2442_s11, %s2437_s7 }
  0x39   : > { %p2440_p5 = pnand %p2439_p0, %p2438_p13 }
  0x3a   : > { %p2445_p6 = por %p2444_p2, %p2443_p1 }
  0x3b   : > { %p2441_p10 = pneg %p2440_p5 }
  0x3d   : > { %p2446_p12 = pnand %p2445_p6, %p2441_p10 }
  0x3f   : > { %2449 = shalt.err (!%p2446_p12)
}
  0x40   : > { %s2450_s22 = scalar_lea.vmem %s2666_s29, 512  ;;  %s2541_s25 = smov [#allocation2]  }
  0x41   : > { %p2451_p3 = scmp.ne.s32.totalorder %s2666_s29, %s2450_s22  ;;  %s2455_s26 = sshll.u32 %s2541_s25, 4  ;;  %s2456_s26 = int_to_ptr.vmem [resolvable:$false] %s2455_s26 }
  0x42   : > { %s2457_s28 = scalar_lea.vmem %s2456_s26, 1024  ;;  %p2458_p5 = scmp.lt.s32.totalorder %s2666_s29, %s2456_s26 }
  0x43   : > { %p2453_p9 = pnand %p2451_p3, %p2439_p0  ;;  %p2459_p7 = scmp.lt.s32.totalorder %s2457_s28, %s2450_s22 }
  0x45   : > { %p2454_p13 = pneg %p2453_p9  ;;  %p2460_p4 = por %p2459_p7, %p2458_p5 }
  0x47   : > { %p2461_p8 = pnand %p2460_p4, %p2454_p13 }
  0x49   : > { %2464 = shalt.err (!%p2461_p8)
}
  0x4a   : > { %2333 = dma.hbm_to_vmem [thread:$0]  (!%p2668_p11), %s2664_s27, 512, %s2666_s29, %s2672_s4, %s2539_s5, %s2539_s5, %s2540_s6  }
  0x4b   : > { %p4208_p0 = scmp.ne.s32.totalorder %s4203_s20, 0 }
  0x4d   : > { %181 = sbr.rel (%p4208_p0) target bundleno = 679 (0x2a7), region = 32 }
  0x52   : > { %s2699_s7 = sand.u32 1, %s2525_s13   ;;  %p4209_p4 = scmp.ne.s32.totalorder %s4201_s18, 0 }
  0x53   : > { %s2300_s8 = sshll.u32 %s2699_s7, 5  ;;  %s184_s10 = scalar_lea.sflag [#allocation3], %s2699_s7 }
  0x54   : > { %s187_s30 = scalar_lea.vmem [#allocation2], %s2300_s8 }
  0x55   : > { %2508 = dma.done.wait (%p4209_p4), %s184_s10, 512  }
  0x56   : > { %2510 = vsyncadd (%p4209_p4), %s184_s10, 4294966784  ;;  %p4210_p8 = scmp.eq.s32.totalorder %s2587_s16, 0 }
  0x58   : > { %2512 = dma.done.wait (%p4210_p8), [#allocation6], 8448   ;;  %p4211_p7 = pmov %p4210_p8 }
  0x59   : > { %v3975_v0 = vmov 0.0   ;;  %vm224_vm0 = vcmask 130048   ;;  %v221_v1 = vld [vmem:[%s187_s30 + $0x18] sm:$0xff]  ;;  %v220_v2 = vld [vmem:[%s187_s30 + $0x10] sm:$0xff]  ;;  %v219_v3 = vld [vmem:[%s187_s30 + $0x8] sm:$0xff]  ;;  %s217_s18 = scalar_lea.vmem [#allocation8], %s2300_s8 }
  0x5a   : > { %2514 = vsyncadd (%p4211_p7), [#allocation6], 4294958848  ;;  %299 = vmatprep.mubr.f32.mxu0 %v3975_v0  ;;  %406 = vmatprep.mubr.f32.mxu1 %v3975_v0  ;;  %v2715_v4 = vand.u32 4294901760, %v221_v1  ;;  %v2717_v5 = vand.u32 4294901760, %v220_v2  ;;  %v2719_v6 = vand.u32 4294901760, %v219_v3  ;;  %v218_v7 = vld [vmem:[%s187_s30] sm:$0xff] }
  0x5b   : > { %v222_v8 = vld [vmem:[#allocation5] sm:$0xff]  ;;  %v223_v9 = vld [vmem:[#allocation5 + $0x8] sm:$0xff]  ;;  %v2721_v10 = vand.u32 4294901760, %v218_v7  ;;  %v800_v38 = vld [vmem:[#allocation7 + $0xe8] sm:$0xff]  ;;  %s2199_s20 = sshll.u32 %s217_s18, 4  ;;  %s2310_s5 = sshll.u32 %s2587_s16, 9  ;;  %s3906_s20 = int_to_ptr.vmem [resolvable:$true] %s2199_s20 }
  0x5c   : > { %v226_v11 = vsel %vm224_vm0, %v222_v8, 0  ;;  %v229_v12 = vsel %vm224_vm0, %v223_v9, 0  ;;  %v802_v13 = vld [vmem:[#allocation7 + $0xf8] sm:$0xff]  ;;  %v801_v14 = vld [vmem:[#allocation7 + $0xf0] sm:$0xff]  ;;  %260 = vmatprep.subr.mxu0 %v2715_v4  ;;  %v2725_v15 = vsub.f32 %v221_v1, %v2715_v4  ;;  %v2730_v17 = vsub.f32 %v220_v2, %v2717_v5  ;;  %v799_v39 = vld [vmem:[#allocation7 + $0xe0] sm:$0xff]  ;;  %s3911_s29 = scalar_lea.hbm %s3957_s3, %s2310_s5  ;;  %s2186_s4 = scalar_lea.sflag [#allocation4], %s2699_s7 }
  0x5d   : > { %v2727_v16 = vand.u32 4294901760, %v226_v11  ;;  %v2733_v18 = vsub.f32 %v219_v3, %v2719_v6  ;;  %262 = vmatpush1.msra.mxu0 %v2717_v5  ;;  %v2737_v19 = vsub.f32 %v218_v7, %v2721_v10  ;;  %v2739_v20 = vand.u32 4294901760, %v229_v12  ;;  %v798_v40 = vld [vmem:[#allocation7 + $0xd8] sm:$0xff]  ;;  %v797_v45 = vld [vmem:[#allocation7 + $0xd0] sm:$0xff]  ;;  %v796_v49 = vld [vmem:[#allocation7 + $0xc8] sm:$0xff]  ;;  %s2465_s16 = scalar_lea.vmem %s3906_s20, 512 }
  0x5e   : > { %v2741_v21 = vand.u32 4294901760, %v802_v13  ;;  %v2743_v22 = vand.u32 4294901760, %v801_v14  ;;  %264 = vmatprep.subr.mxu0 %v2719_v6  ;;  %v352_v23 = vand.u32 4294901760, %v2725_v15  ;;  %v358_v25 = vand.u32 4294901760, %v2730_v17  ;;  %v795_v50 = vld [vmem:[#allocation7 + $0xc0] sm:$0xff]  ;;  %v794_v55 = vld [vmem:[#allocation7 + $0xb8] sm:$0xff]  ;;  %p2466_p11 = scmp.ne.s32.totalorder %s3906_s20, %s2465_s16 }
  0x5f   : > { %v2748_v24 = vsub.f32 %v226_v11, %v2727_v16  ;;  %v364_v26 = vand.u32 4294901760, %v2733_v18  ;;  %266 = vmatpush1.msra.mxu0 %v2721_v10  ;;  %v370_v27 = vand.u32 4294901760, %v2737_v19  ;;  %v2755_v28 = vsub.f32 %v229_v12, %v2739_v20  ;;  %v793_v56 = vld [vmem:[#allocation7 + $0xb0] sm:$0xff]  ;;  %p4574_p10 = scmp.ne.s32.totalorder %s4206_s21, 0  ;;  %s2543_s11 = smov [#allocation8]  }
  0x60   : > { %4212 = vst [vmem:[#allocation12_spill] sm:$0xff] %v2741_v21  ;;  %v2758_v29 = vsub.f32 %v802_v13, %v2741_v21  ;;  %v2761_v30 = vsub.f32 %v801_v14, %v2743_v22  ;;  %v353_v31 = vsub.f32 %v2725_v15, %v352_v23  ;;  %v359_v33 = vsub.f32 %v2730_v17, %v358_v25  ;;  %s2469_s23 = sshll.u32 %s2543_s11, 4  ;;  %s2470_s23 = int_to_ptr.vmem [resolvable:$false] %s2469_s23 }
  0x61   : > { %v302_v32 = vand.u32 4294901760, %v2748_v24  ;;  %v365_v34 = vsub.f32 %v2733_v18, %v364_v26  ;;  %451 = vmatprep.subr.mxu0 %v2725_v15  ;;  %v371_v35 = vsub.f32 %v2737_v19, %v370_v27  ;;  %v313_v36 = vand.u32 4294901760, %v2755_v28  ;;  %v787_v15 = vld [vmem:[#allocation7 + $0x80] sm:$0xff]  ;;  %p2467_p1 = pnand %p2466_p11, %p4574_p10  ;;  %s2471_s24 = scalar_lea.vmem %s2470_s23, 1024 }
  0x62   : > { %4213 = vst [vmem:[#allocation13_spill] sm:$0xff] %v2758_v29  ;;  %v3967_v37 = vand.u32 4294901760, %v2758_v29  ;;  %v354_v41 = vand.u32 4294901760, %v353_v31  ;;  %v360_v43 = vand.u32 4294901760, %v359_v33  ;;  %v3966_v48 = vand.u32 4294901760, %v2761_v30  ;;  %p2472_p6 = scmp.lt.s32.totalorder %s3906_s20, %s2470_s23  ;;  %p2473_p12 = scmp.lt.s32.totalorder %s2471_s24, %s2465_s16 }
  0x63   : > { %v303_v42 = vsub.f32 %v2748_v24, %v302_v32  ;;  %v366_v44 = vand.u32 4294901760, %v365_v34  ;;  %v372_v46 = vand.u32 4294901760, %v371_v35  ;;  %v314_v47 = vsub.f32 %v2755_v28, %v313_v36  ;;  %p2468_p2 = pneg %p2467_p1 }
  0x64   : > { %355 = vmatprep.subr.mxu1 %v354_v41  ;;  %v2786_v52 = vand.u32 4294901760, %v800_v38  ;;  %v2788_v53 = vand.u32 4294901760, %v799_v39  ;;  %v2790_v54 = vand.u32 4294901760, %v798_v40  ;;  %v2795_v58 = vsub.f32 %v2758_v29, %v3967_v37  ;;  %v791_v41 = vld [vmem:[#allocation7 + $0xa0] sm:$0xff]  ;;  %p2474_p3 = por %p2473_p12, %p2472_p6 }
  0x65   : > { %v304_v51 = vand.u32 4294901760, %v303_v42  ;;  %361 = vmatpush1.msra.mxu1 %v360_v43  ;;  %v315_v57 = vand.u32 4294901760, %v314_v47  ;;  %v2797_v59 = vand.u32 4294901760, %v797_v45  ;;  %v2808_v63 = vand.u32 4294901760, %v796_v49  ;;  %v790_v42 = vld [vmem:[#allocation7 + $0x98] sm:$0xff] }
  0x66   : > { %367 = vmatprep.subr.mxu1 %v366_v44  ;;  %v2800_v60 = vsub.f32 %v800_v38, %v2786_v52  ;;  %v2803_v61 = vsub.f32 %v799_v39, %v2788_v53  ;;  %v2806_v62 = vsub.f32 %v798_v40, %v2790_v54  ;;  %v2814_v2 = vand.u32 4294901760, %v795_v50  ;;  %v792_v40 = vld [vmem:[#allocation7 + $0xa8] sm:$0xff]  ;;  %p2475_p9 = pnand %p2474_p3, %p2468_p2 }
  0x67   : > { %305 = vmatmul.mubr.f32.vlgmr.msra.gmra.mxu0 %v304_v51  ;;  %373 = vmatpush1.msra.mxu1 %v372_v46  ;;  %v2812_v1 = vsub.f32 %v797_v45, %v2797_v59  ;;  %v2816_v3 = vand.u32 4294901760, %v794_v55  ;;  %v2818_v7 = vand.u32 4294901760, %v793_v56  ;;  %v2825_v8 = vsub.f32 %v2761_v30, %v3966_v48  ;;  %v789_v45 = vld [vmem:[#allocation7 + $0x90] sm:$0xff]  ;;  %v788_v51 = vld [vmem:[#allocation7 + $0x88] sm:$0xff] }
  0x68   : > { %4214 = vst [vmem:[#allocation14_spill] sm:$0xff] %v2803_v61  ;;  %4215 = vst [vmem:[#allocation15_spill] sm:$0xff] %v2806_v62  ;;  %454 = vmatpush1.msra.mxu0 %v2730_v17  ;;  %310 = vmatprep.mubr.f32.mxu0 %v3975_v0  ;;  %v3965_v9 = vand.u32 4294901760, %v2800_v60  ;;  %v3963_v11 = vand.u32 4294901760, %v2803_v61  ;;  %v2830_v12 = vsub.f32 %v796_v49, %v2808_v63  ;;  %v3962_v13 = vand.u32 4294901760, %v2806_v62 }
  0x69   : > { %4216 = vst [vmem:[#allocation16_spill] sm:$0xff] %v2812_v1  ;;  %408 = vmatmul.mubr.f32.vlgmr.msra.gmra.mxu1 %v2727_v16  ;;  %539 = vmatprep.subr.mxu1 %v2715_v4  ;;  %v3964_v14 = vand.u32 4294901760, %v2812_v1  ;;  %v2837_v31 = vsub.f32 %v795_v50, %v2814_v2  ;;  %v2840_v33 = vsub.f32 %v794_v55, %v2816_v3  ;;  %v1000_v43 = vand.u32 4294901760, %v2795_v58  ;;  %v779_v58 = vld [vmem:[#allocation7 + $0x40] sm:$0xff] }
  0x6a   : > { %4217 = vst [vmem:[#allocation17_spill] sm:$0xff] %v2830_v12  ;;  %457 = vmatprep.subr.mxu0 %v2733_v18  ;;  %541 = vmatpush1.msra.mxu1 %v2717_v5  ;;  %v2844_v34 = vsub.f32 %v793_v56, %v2818_v7  ;;  %v3969_v35 = vand.u32 4294901760, %v2830_v12  ;;  %v2857_v44 = vsub.f32 %v2800_v60, %v3965_v9  ;;  %v2881_v55 = vand.u32 4294901760, %v792_v40 }
  0x6b   : > { %4218 = vst [vmem:[#allocation18_spill] sm:$0xff] %v2837_v31  ;;  %4219 = vst [vmem:[#allocation19_spill] sm:$0xff] %v2840_v33  ;;  %316 = vmatmul.mubr.f32.gmra.mxu0 %v315_v57  ;;  %413 = vmatprep.mubr.f32.mxu1 %v3975_v0  ;;  %v3968_v38 = vand.u32 4294901760, %v2837_v31  ;;  %v3970_v39 = vand.u32 4294901760, %v2840_v33  ;;  %v2866_v47 = vsub.f32 %v2803_v61, %v3963_v11  ;;  %v2883_v56 = vand.u32 4294901760, %v791_v41  ;;  %v785_v11 = vld [vmem:[#allocation7 + $0x70] sm:$0xff] }
  0x6c   : > { %4220 = vst [vmem:[#allocation20_spill] sm:$0xff] %v2844_v34  ;;  %460 = vmatpush1.msra.mxu0 %v2737_v19  ;;  %493 = vmatprep.mubr.f32.mxu0 %v3975_v0  ;;  %v2871_v49 = vsub.f32 %v2806_v62, %v3962_v13  ;;  %v2876_v50 = vsub.f32 %v2812_v1, %v3964_v14  ;;  %v2885_v57 = vand.u32 4294901760, %v790_v42  ;;  %v786_v13 = vld [vmem:[#allocation7 + $0x78] sm:$0xff]  ;;  %v2905_v37 = vand.u32 4294901760, %v789_v45  ;;  %v831_v61 = vld [vmem:[#allocation7 + $0x1e0] sm:$0xff] }
  0x6d   : > { %415 = vmatmul.mubr.f32.gmra.mxu1 %v2739_v20  ;;  %543 = vmatprep.subr.mxu1 %v2719_v6  ;;  %4221 = vst [vmem:[#allocation21_spill] sm:$0xff] %v2883_v56  ;;  %v2893_v14 = vsub.f32 %v2830_v12, %v3969_v35  ;;  %v2898_v9 = vsub.f32 %v2837_v31, %v3968_v38  ;;  %v2919_v35 = vand.u32 4294901760, %v788_v51  ;;  %v1018_v19 = vand.u32 4294901760, %v2866_v47  ;;  %v782_v47 = vld [vmem:[#allocation7 + $0x58] sm:$0xff] }
  0x6e   : > { %628 = vmatprep.subr.mxu0 %v352_v23  ;;  %545 = vmatpush1.msra.mxu1 %v2721_v10  ;;  %v3971_v23 = vand.u32 4294901760, %v2844_v34  ;;  %v2903_v48 = vsub.f32 %v2840_v33, %v3970_v39  ;;  %v2911_v17 = vsub.f32 %v792_v40, %v2881_v55  ;;  %v2917_v38 = vsub.f32 %v790_v42, %v2885_v57  ;;  %v834_v31 = vld [vmem:[#allocation7 + $0x1f8] sm:$0xff] }
  0x6f   : > { %496 = vmatmul.mubr.f32.vlgmr.msra.gmra.mxu0 %v2748_v24  ;;  %578 = vmatprep.mubr.f32.mxu1 %v3975_v0  ;;  %v2925_v39 = vsub.f32 %v789_v45, %v2905_v37  ;;  %v2927_v24 = vand.u32 4294901760, %v787_v15  ;;  %v2931_v40 = vand.u32 4294901760, %v785_v11 }
  0x70   : > { %632 = vmatpush1.msra.mxu0 %v358_v25  ;;  %501 = vmatprep.mubr.f32.mxu0 %v3975_v0  ;;  %4222 = vst [vmem:[#allocation22_spill] sm:$0xff] %v2911_v17  ;;  %v2914_v25 = vsub.f32 %v791_v41, %v2883_v56  ;;  %4224 = vst [vmem:[#allocation24_spill] sm:$0xff] %v2917_v38  ;;  %v3972_v18 = vand.u32 4294901760, %v2911_v17  ;;  %v2943_v41 = vsub.f32 %v788_v51, %v2919_v35 }
  0x71   : > { %582 = vmatmul.mubr.f32.vlgmr.msra.gmra.mxu1 %v302_v32  ;;  %717 = vmatprep.subr.mxu1 %v2715_v4  ;;  %4225 = vst [vmem:[#allocation25_spill] sm:$0xff] %v2925_v39  ;;  %v2929_v32 = vand.u32 4294901760, %v786_v13  ;;  %v2938_v4 = vsub.f32 %v2844_v34, %v3971_v23  ;;  %v3974_v42 = vand.u32 4294901760, %v2917_v38  ;;  %v2951_v45 = vsub.f32 %v787_v15, %v2927_v24  ;;  %v783_v15 = vld [vmem:[#allocation7 + $0x60] sm:$0xff] }
  0x72   : > { %4223 = vst [vmem:[#allocation23_spill] sm:$0xff] %v2914_v25  ;;  %636 = vmatprep.subr.mxu0 %v364_v26  ;;  %719 = vmatpush1.msra.mxu1 %v2717_v5  ;;  %v3973_v26 = vand.u32 4294901760, %v2914_v25  ;;  %4226 = vst [vmem:[#allocation26_spill] sm:$0xff] %v2943_v41  ;;  %v1012_v51 = vand.u32 4294901760, %v2857_v44  ;;  %v2963_v46 = vsub.f32 %v785_v11, %v2931_v40  ;;  %v784_v5 = vld [vmem:[#allocation7 + $0x68] sm:$0xff]  ;;  %v1036_v11 = vand.u32 4294901760, %v2893_v14 }
  0x73   : > { %504 = vmatmul.mubr.f32.gmra.mxu0 %v2755_v28  ;;  %587 = vmatprep.mubr.f32.mxu1 %v3975_v0  ;;  %4227 = vst [vmem:[#allocation27_spill] sm:$0xff] %v2951_v45  ;;  %v2954_v23 = vsub.f32 %v786_v13, %v2929_v32  ;;  %v1030_v13 = vand.u32 4294901760, %v2876_v50  ;;  %v2979_v50 = vsub.f32 %v2911_v17, %v3972_v18  ;;  %v4230_v14 = vand.u32 4294901760, %v2925_v39 }
  0x74   : > { %640 = vmatpush1.msra.mxu0 %v370_v27  ;;  %673 = vmatprep.mubr.f32.mxu0 %v3975_v0  ;;  %v1024_v27 = vand.u32 4294901760, %v2871_v49  ;;  %4229 = vst [vmem:[#allocation29_spill] sm:$0xff] %v2963_v46  ;;  %v780_v49 = vld [vmem:[#allocation7 + $0x48] sm:$0xff]  ;;  %v3005_v44 = vand.u32 4294901760, %v783_v15  ;;  %v3007_v28 = vand.u32 4294901760, %v782_v47 }
  0x75   : > { %4228 = vst [vmem:[#allocation28_spill] sm:$0xff] %v2954_v23  ;;  %591 = vmatmul.mubr.f32.gmra.mxu1 %v313_v36  ;;  %721 = vmatprep.subr.mxu1 %v2719_v6  ;;  %v1042_v6 = vand.u32 4294901760, %v2898_v9  ;;  %v781_v36 = vld [vmem:[#allocation7 + $0x50] sm:$0xff]  ;;  %v2993_v9 = vsub.f32 %v2917_v38, %v3974_v42  ;;  %v2998_v18 = vsub.f32 %v2925_v39, %v4230_v14  ;;  %v778_v42 = vld [vmem:[#allocation7 + $0x38] sm:$0xff]  ;;  %v4231_v38 = vmov 0.0  }
  0x76   : > { %756 = vmatprep.mubr.f32.mxu1 %v3975_v0  ;;  %723 = vmatpush1.msra.mxu1 %v2721_v10  ;;  %v2988_v10 = vsub.f32 %v2914_v25, %v3973_v26  ;;  %v3003_v26 = vand.u32 4294901760, %v784_v5  ;;  %v4232_v14 = vand.u32 4294901760, %v2825_v8  ;;  %v4233_v39 = vand.u32 4294901760, %v2943_v41 }
  0x77   : > { %675 = vmatmul.mubr.f32.vlgmr.msra.gmra.mxu0 %v2727_v16  ;;  %1001 = vmatprep.subr.mxu1 %v1000_v43  ;;  %v4234_v43 = vand.u32 4294901760, %v2951_v45  ;;  %v4235_v17 = vand.u32 4294901760, %v2954_v23  ;;  %v3027_v33 = vand.u32 4294901760, %v781_v36 }
  0x78   : > { %680 = vmatprep.mubr.f32.mxu0 %v3975_v0  ;;  %836 = vmatprep.subr.mxu0 %v2741_v21  ;;  %v777_v0 = vld [vmem:[#allocation7 + $0x30] sm:$0xff]  ;;  %v3031_v8 = vsub.f32 %v784_v5, %v3003_v26 }
  0x79   : > { %758 = vmatmul.mubr.f32.vlgmr.msra.gmra.mxu1 %v2727_v16  ;;  %v3015_v16 = vsub.f32 %v2943_v41, %v4233_v39  ;;  %v3020_v25 = vsub.f32 %v2951_v45, %v4234_v43  ;;  %v3025_v34 = vsub.f32 %v2954_v23, %v4235_v17  ;;  %v3037_v39 = vsub.f32 %v782_v47, %v3007_v28  ;;  %v774_v45 = vld [vmem:[#allocation7 + $0x18] sm:$0xff]  ;;  %v771_v41 = vld [vmem:[#allocation7] sm:$0xff] }
  0x7a   : > { %763 = vmatprep.mubr.f32.mxu1 %v4231_v38  ;;  %1007 = vmatpush1.msra.mxu1 %v4232_v14  ;;  %4236 = vst [vmem:[#allocation30_spill] sm:$0xff] %v3031_v8  ;;  %v3034_v38 = vsub.f32 %v783_v15, %v3005_v44  ;;  %v3039_v43 = vand.u32 4294901760, %v780_v49  ;;  %v3043_v17 = vsub.f32 %v781_v36, %v3027_v33  ;;  %v3045_v14 = vand.u32 4294901760, %v779_v58 }
  0x7b   : > { %682 = vmatmul.mubr.f32.gmra.mxu0 %v2739_v20  ;;  %1013 = vmatprep.subr.mxu1 %v1012_v51  ;;  %4238 = vst [vmem:[#allocation32_spill] sm:$0xff] %v3037_v39  ;;  %v3047_v51 = vand.u32 4294901760, %v778_v42  ;;  %v3049_v5 = vand.u32 4294901760, %v777_v0  ;;  %v4240_v15 = vand.u32 4294901760, %v2963_v46 }
  0x7c   : > { %4237 = vst [vmem:[#allocation31_spill] sm:$0xff] %v3034_v38  ;;  %1019 = vmatpush1.msra.mxu1 %v1018_v19  ;;  %838 = vmatpush1.msra.mxu0 %v2743_v22  ;;  %4239 = vst [vmem:[#allocation33_spill] sm:$0xff] %v3043_v17  ;;  %v3060_v36 = vsub.f32 %v780_v49, %v3039_v43  ;;  %v1060_v19 = vand.u32 4294901760, %v2979_v50  ;;  %v1066_v49 = vand.u32 4294901760, %v2988_v10  ;;  %v4246_v50 = vand.u32 4294901760, %v3034_v38 }
  0x7d   : > { %765 = vmatmul.mubr.f32.gmra.mxu1 %v2739_v20  ;;  %1025 = vmatprep.subr.mxu1 %v1024_v27  ;;  %v3055_v47 = vsub.f32 %v2963_v46, %v4240_v15  ;;  %v3066_v27 = vsub.f32 %v779_v58, %v3045_v14  ;;  %v3069_v15 = vsub.f32 %v778_v42, %v3047_v51  ;;  %v1078_v58 = vand.u32 4294901760, %v2998_v18 }
  0x7e   : > { %4241 = vst [vmem:[#allocation34_spill] sm:$0xff] %v3060_v36  ;;  %1031 = vmatpush1.msra.mxu1 %v1030_v13  ;;  %840 = vmatprep.subr.mxu0 %v2786_v52  ;;  %v1072_v13 = vand.u32 4294901760, %v2993_v9  ;;  %v3076_v23 = vsub.f32 %v777_v0, %v3049_v5  ;;  %v4245_v42 = vand.u32 4294901760, %v3031_v8  ;;  %v3088_v20 = vsub.f32 %v3034_v38, %v4246_v50  ;;  %v776_v9 = vld [vmem:[#allocation7 + $0x28] sm:$0xff]  ;;  %v775_v0 = vld [vmem:[#allocation7 + $0x20] sm:$0xff]  ;;  %v773_v50 = vld [vmem:[#allocation7 + $0x10] sm:$0xff] }
  0x7f   : > { %4242 = vst [vmem:[#allocation35_spill] sm:$0xff] %v3066_v27  ;;  %4243 = vst [vmem:[#allocation36_spill] sm:$0xff] %v3069_v15  ;;  %1037 = vmatprep.subr.mxu1 %v1036_v11  ;;  %842 = vmatpush1.msra.mxu0 %v2788_v53  ;;  %v1084_v18 = vand.u32 4294901760, %v3015_v16  ;;  %v1102_v46 = vand.u32 4294901760, %v3055_v47  ;;  %v4248_v38 = vand.u32 4294901760, %v2938_v4  ;;  %v4249_v10 = vand.u32 4294901760, %v3037_v39 }
  0x80   : > { %4244 = vst [vmem:[#allocation37_spill] sm:$0xff] %v3076_v23  ;;  %1043 = vmatpush1.msra.mxu1 %v1042_v6  ;;  %844 = vmatprep.subr.mxu0 %v2790_v54  ;;  %v3083_v11 = vsub.f32 %v3031_v8, %v4245_v42  ;;  %v4247_v6 = vand.u32 4294901760, %v2903_v48  ;;  %v1090_v42 = vand.u32 4294901760, %v3020_v25  ;;  %v1096_v8 = vand.u32 4294901760, %v3025_v34  ;;  %v772_v47 = vld [vmem:[#allocation7 + $0x8] sm:$0xff] }
  0x81   : > { %846 = vmatpush1.msra.mxu0 %v2797_v59  ;;  %v3104_v48 = vsub.f32 %v3037_v39, %v4249_v10  ;;  %v3117_v10 = vand.u32 4294901760, %v775_v0  ;;  %v3119_v39 = vand.u32 4294901760, %v774_v45  ;;  %v1114_v34 = vand.u32 4294901760, %v3088_v20 }
  0x82   : > { %1049 = vmatprep.subr.mxu1 %v4247_v6  ;;  %848 = vmatprep.subr.mxu0 %v2808_v63  ;;  %v4250_v6 = vand.u32 4294901760, %v3043_v17  ;;  %v1108_v25 = vand.u32 4294901760, %v3083_v11  ;;  %v3129_v4 = vand.u32 4294901760, %v773_v50  ;;  %v3141_v20 = vand.u32 4294901760, %v772_v47 }
  0x83   : > { %1055 = vmatpush1.msra.mxu1 %v4248_v38  ;;  %850 = vmatpush1.msra.mxu0 %v2814_v2  ;;  %v3115_v38 = vand.u32 4294901760, %v776_v9  ;;  %v3139_v11 = vsub.f32 %v774_v45, %v3119_v39  ;;  %v4261_v45 = vand.u32 4294901760, %v3066_v27 }
  0x84   : > { %v3109_v16 = vsub.f32 %v3043_v17, %v4250_v6  ;;  %1061 = vmatprep.subr.mxu1 %v1060_v19  ;;  %v833_v6 = vld [vmem:[#allocation7 + $0x1f0] sm:$0xff]  ;;  %852 = vmatprep.subr.mxu0 %v2816_v3  ;;  %v4251_v19 = vand.u32 4294901760, %v3060_v36  ;;  %4252 = vst [vmem:[#allocation38_spill] sm:$0xff] %v3129_v4  ;;  %4256 = vst [vmem:[#allocation42_spill] sm:$0xff] %v3141_v20  ;;  %v3162_v62 = vsub.f32 %v772_v47, %v3141_v20 }
  0x85   : > { %1067 = vmatpush1.msra.mxu1 %v1066_v49  ;;  %854 = vmatpush1.msra.mxu0 %v2818_v7  ;;  %v3133_v12 = vsub.f32 %v776_v9, %v3115_v38  ;;  %v3136_v49 = vsub.f32 %v775_v0, %v3117_v10  ;;  %4255 = vst [vmem:[#allocation41_spill] sm:$0xff] %v3139_v11  ;;  %v3151_v9 = vand.u32 4294901760, %v833_v6 }
  0x86   : > { %v3127_v17 = vsub.f32 %v3060_v36, %v4251_v19  ;;  %1073 = vmatprep.subr.mxu1 %v1072_v13  ;;  %856 = vmatprep.subr.mxu0 %v2881_v55  ;;  %v3145_v19 = vsub.f32 %v773_v50, %v3129_v4  ;;  %v3147_v13 = vand.u32 4294901760, %v771_v41  ;;  %v3149_v36 = vand.u32 4294901760, %v834_v31  ;;  %4263 = vst [vmem:[#allocation47_spill] sm:$0xff] %v3162_v62 }
  0x87   : > { %4253 = vst [vmem:[#allocation39_spill] sm:$0xff] %v3133_v12  ;;  %4254 = vst [vmem:[#allocation40_spill] sm:$0xff] %v3136_v49  ;;  %1079 = vmatpush1.msra.mxu1 %v1078_v58  ;;  %858 = vmatpush1.msra.mxu0 %v2883_v56  ;;  %v1137_v0 = vsub.f32 %v3066_v27, %v4261_v45  ;;  %v4262_v58 = vand.u32 4294901760, %v3069_v15  ;;  %v1126_v47 = vand.u32 4294901760, %v3109_v16  ;;  %v4268_v16 = vand.u32 4294901760, %v3133_v12 }
  0x88   : > { %4257 = vst [vmem:[#allocation43_spill] sm:$0xff] %v3145_v19  ;;  %4258 = vst [vmem:[#allocation44_spill] sm:$0xff] %v3147_v13  ;;  %1085 = vmatprep.subr.mxu1 %v1084_v18  ;;  %860 = vmatprep.subr.mxu0 %v2885_v57  ;;  %v4264_v18 = vand.u32 4294901760, %v3076_v23  ;;  %v3171_v27 = vsub.f32 %v771_v41, %v3147_v13  ;;  %v3183_v41 = vsub.f32 %v833_v6, %v3151_v9 }
  0x89   : > { %4259 = vst [vmem:[#allocation45_spill] sm:$0xff] %v3149_v36  ;;  %4260 = vst [vmem:[#allocation46_spill] sm:$0xff] %v3151_v9  ;;  %v1143_v1 = vsub.f32 %v3069_v15, %v4262_v58  ;;  %1091 = vmatpush1.msra.mxu1 %v1090_v42  ;;  %v1120_v58 = vand.u32 4294901760, %v3104_v48  ;;  %862 = vmatpush1.msra.mxu0 %v2905_v37  ;;  %v3176_v42 = vsub.f32 %v834_v31, %v3149_v36  ;;  %v830_v48 = vld [vmem:[#allocation7 + $0x1d8] sm:$0xff] }
  0x8a   : > { %v1149_v56 = vsub.f32 %v3076_v23, %v4264_v18  ;;  %4265 = vst [vmem:[#allocation48_spill] sm:$0xff] %v3171_v27  ;;  %1097 = vmatprep.subr.mxu1 %v1096_v8  ;;  %864 = vmatprep.subr.mxu0 %v2919_v35  ;;  %4267 = vst [vmem:[#allocation50_spill] sm:$0xff] %v3183_v41  ;;  %v832_v8 = vld [vmem:[#allocation7 + $0x1e8] sm:$0xff]  ;;  %v1132_v50 = vand.u32 4294901760, %v3127_v17  ;;  %v1138_v31 = vand.u32 4294901760, %v1137_v0  ;;  %v829_v18 = vld [vmem:[#allocation7 + $0x1d0] sm:$0xff] }
  0x8b   : > { %4266 = vst [vmem:[#allocation49_spill] sm:$0xff] %v3176_v42  ;;  %1103 = vmatpush1.msra.mxu1 %v1102_v46  ;;  %866 = vmatpush1.msra.mxu0 %v2927_v24  ;;  %v1144_v46 = vand.u32 4294901760, %v1143_v1  ;;  %v1155_v23 = vsub.f32 %v3133_v12, %v4268_v16  ;;  %v4269_v45 = vand.u32 4294901760, %v3136_v49  ;;  %v3200_v16 = vand.u32 4294901760, %v832_v8 }
  0x8c   : > { %1109 = vmatprep.subr.mxu1 %v1108_v25  ;;  %868 = vmatprep.subr.mxu0 %v2929_v32  ;;  %v1150_v6 = vand.u32 4294901760, %v1149_v56  ;;  %v4270_v25 = vand.u32 4294901760, %v3139_v11  ;;  %v3204_v56 = vand.u32 4294901760, %v830_v48  ;;  %v4275_v0 = vand.u32 4294901760, %v3162_v62 }
  0x8d   : > { %1115 = vmatpush1.msra.mxu1 %v1114_v34  ;;  %v1161_v15 = vsub.f32 %v3136_v49, %v4269_v45  ;;  %870 = vmatpush1.msra.mxu0 %v2931_v40  ;;  %4271 = vst [vmem:[#allocation51_spill] sm:$0xff] %v3200_v16  ;;  %v3202_v34 = vand.u32 4294901760, %v831_v61  ;;  %v4274_v45 = vand.u32 4294901760, %v3145_v19  ;;  %v3214_v1 = vand.u32 4294901760, %v829_v18 }
  0x8e   : > { %v1167_v17 = vsub.f32 %v3139_v11, %v4270_v25  ;;  %1121 = vmatprep.subr.mxu1 %v1120_v58  ;;  %4273 = vst [vmem:[#allocation53_spill] sm:$0xff] %v3204_v56  ;;  %872 = vmatprep.subr.mxu0 %v3003_v26  ;;  %v1179_v58 = vsub.f32 %v3162_v62, %v4275_v0  ;;  %v1156_v49 = vand.u32 4294901760, %v1155_v23  ;;  %v4280_v11 = vand.u32 4294901760, %v3171_v27 }
  0x8f   : > { %4272 = vst [vmem:[#allocation52_spill] sm:$0xff] %v3202_v34  ;;  %1127 = vmatpush1.msra.mxu1 %v1126_v47  ;;  %v1173_v25 = vsub.f32 %v3145_v19, %v4274_v45  ;;  %4276 = vst [vmem:[#allocation54_spill] sm:$0xff] %v3214_v1  ;;  %874 = vmatpush1.msra.mxu0 %v3005_v44  ;;  %v3218_v47 = vsub.f32 %v832_v8, %v3200_v16  ;;  %v1162_v19 = vand.u32 4294901760, %v1161_v15 }
  0x90   : > { %1133 = vmatprep.subr.mxu1 %v1132_v50  ;;  %v3221_v12 = vsub.f32 %v831_v61, %v3202_v34  ;;  %v3224_v45 = vsub.f32 %v830_v48, %v3204_v56  ;;  %876 = vmatprep.subr.mxu0 %v3007_v28  ;;  %v1168_v0 = vand.u32 4294901760, %v1167_v17  ;;  %v1185_v23 = vsub.f32 %v3171_v27, %v4280_v11 }
  0x91   : > { %4277 = vst [vmem:[#allocation55_spill] sm:$0xff] %v3218_v47  ;;  %1139 = vmatpush1.msra.mxu1 %v1138_v31  ;;  %v3231_v50 = vsub.f32 %v829_v18, %v3214_v1  ;;  %878 = vmatpush1.msra.mxu0 %v3027_v33  ;;  %v4282_v61 = vand.u32 4294901760, %v3176_v42  ;;  %v4036_v48 = vand.u32 4294901760, %v3218_v47  ;;  %v1174_v17 = vand.u32 4294901760, %v1173_v25 }
  0x92   : > { %4278 = vst [vmem:[#allocation56_spill] sm:$0xff] %v3221_v12  ;;  %4279 = vst [vmem:[#allocation57_spill] sm:$0xff] %v3224_v45  ;;  %1145 = vmatprep.subr.mxu1 %v1144_v46  ;;  %v4035_v15 = vand.u32 4294901760, %v3221_v12  ;;  %880 = vmatprep.subr.mxu0 %v3039_v43  ;;  %v4283_v11 = vand.u32 4294901760, %v3183_v41  ;;  %v1180_v27 = vand.u32 4294901760, %v1179_v58  ;;  %v1186_v31 = vand.u32 4294901760, %v1185_v23 }
  0x93   : > { %4281 = vst [vmem:[#allocation58_spill] sm:$0xff] %v3231_v50  ;;  %v1191_v8 = vsub.f32 %v3176_v42, %v4282_v61  ;;  %1151 = vmatpush1.msra.mxu1 %v1150_v6  ;;  %v4034_v46 = vand.u32 4294901760, %v3231_v50  ;;  %882 = vmatpush1.msra.mxu0 %v3045_v14  ;;  %v1203_v61 = vsub.f32 %v3218_v47, %v4036_v48  ;;  %v822_v48 = vld [vmem:[#allocation7 + $0x198] sm:$0xff] }
  0x94   : > { %v1197_v18 = vsub.f32 %v3183_v41, %v4283_v11  ;;  %1157 = vmatprep.subr.mxu1 %v1156_v49  ;;  %884 = vmatprep.subr.mxu0 %v3047_v51  ;;  %v1209_v6 = vsub.f32 %v3221_v12, %v4035_v15  ;;  %v4284_v49 = vand.u32 4294901760, %v3224_v45  ;;  %v3306_v12 = vand.u32 4294901760, %v822_v48 }
  0x95   : > { %1163 = vmatpush1.msra.mxu1 %v1162_v19  ;;  %v1192_v25 = vand.u32 4294901760, %v1191_v8  ;;  %886 = vmatpush1.msra.mxu0 %v3049_v5  ;;  %v1221_v19 = vsub.f32 %v3231_v50, %v4034_v46  ;;  %v1204_v23 = vand.u32 4294901760, %v1203_v61  ;;  %v821_v46 = vld [vmem:[#allocation7 + $0x190] sm:$0xff]  ;;  %v820_v50 = vld [vmem:[#allocation7 + $0x188] sm:$0xff] }
  0x96   : > { %1169 = vmatprep.subr.mxu1 %v1168_v0  ;;  %v1215_v58 = vsub.f32 %v3224_v45, %v4284_v49  ;;  %v1198_v11 = vand.u32 4294901760, %v1197_v18  ;;  %888 = vmatprep.subr.mxu0 %v3115_v38  ;;  %v1210_v0 = vand.u32 4294901760, %v1209_v6  ;;  %v827_v18 = vld [vmem:[#allocation7 + $0x1c0] sm:$0xff]  ;;  %v826_v6 = vld [vmem:[#allocation7 + $0x1b8] sm:$0xff]  ;;  %4296 = vst [vmem:[#allocation70_spill] sm:$0xff] %v3306_v12  ;;  %v3324_v62 = vsub.f32 %v822_v48, %v3306_v12 }
  0x97   : > { %1175 = vmatpush1.msra.mxu1 %v1174_v17  ;;  %890 = vmatpush1.msra.mxu0 %v3117_v10  ;;  %v1222_v17 = vand.u32 4294901760, %v1221_v19  ;;  %v3270_v61 = vand.u32 4294901760, %v827_v18  ;;  %v3276_v49 = vand.u32 4294901760, %v826_v6 }
  0x98   : > { %1181 = vmatprep.subr.mxu1 %v1180_v27  ;;  %892 = vmatprep.subr.mxu0 %v3119_v39  ;;  %v1216_v8 = vand.u32 4294901760, %v1215_v58  ;;  %v828_v27 = vld [vmem:[#allocation7 + $0x1c8] sm:$0xff]  ;;  %v825_v58 = vld [vmem:[#allocation7 + $0x1b0] sm:$0xff]  ;;  %4301 = vst [vmem:[#allocation73_spill] sm:$0xff] %v3324_v62 }
  0x99   : > { %1187 = vmatpush1.msra.mxu1 %v1186_v31  ;;  %894 = vmatpush1.msra.mxu0 %v3129_v4  ;;  %v3267_v31 = vand.u32 4294901760, %v828_v27  ;;  %4286 = vst [vmem:[#allocation60_spill] sm:$0xff] %v3270_v61  ;;  %4288 = vst [vmem:[#allocation62_spill] sm:$0xff] %v3276_v49  ;;  %v3282_v19 = vand.u32 4294901760, %v825_v58 }
  0x9a   : > { %1193 = vmatprep.subr.mxu1 %v1192_v25  ;;  %896 = vmatprep.subr.mxu0 %v3141_v20 }
  0x9b   : > { %1199 = vmatpush2.msra.mxu1 %v1198_v11  ;;  %898 = vmatpush1.msra.mxu0 %v3147_v13  ;;  %4285 = vst [vmem:[#allocation59_spill] sm:$0xff] %v3267_v31  ;;  %v3274_v25 = vsub.f32 %v828_v27, %v3267_v31  ;;  %v3280_v11 = vsub.f32 %v827_v18, %v3270_v61  ;;  %4290 = vst [vmem:[#allocation64_spill] sm:$0xff] %v3282_v19  ;;  %v823_v27 = vld [vmem:[#allocation7 + $0x1a0] sm:$0xff] }
  0x9c   : > { %1205 = vmatprep.subr.mxu1 %v1204_v23  ;;  %900 = vmatprep.subr.mxu0 %v3149_v36  ;;  %v824_v23 = vld [vmem:[#allocation7 + $0x1a8] sm:$0xff]  ;;  %v3294_v18 = vsub.f32 %v825_v58, %v3282_v19  ;;  %v3296_v15 = vand.u32 4294901760, %v823_v27 }
  0x9d   : > { %1211 = vmatpush2.msra.mxu1 %v1210_v0  ;;  %902 = vmatpush2.msra.mxu0 %v3151_v9  ;;  %4287 = vst [vmem:[#allocation61_spill] sm:$0xff] %v3274_v25  ;;  %4289 = vst [vmem:[#allocation63_spill] sm:$0xff] %v3280_v11  ;;  %v4049_v0 = vand.u32 4294901760, %v3274_v25  ;;  %v4297_v58 = vand.u32 4294901760, %v3280_v11 }
  0x9e   : > { %1217 = vmatprep.subr.mxu1 %v1216_v8  ;;  %904 = vmatprep.subr.mxu0 %v3200_v16  ;;  %v3287_v8 = vsub.f32 %v826_v6, %v3276_v49  ;;  %4293 = vst [vmem:[#allocation67_spill] sm:$0xff] %v3294_v18  ;;  %4294 = vst [vmem:[#allocation68_spill] sm:$0xff] %v3296_v15  ;;  %v4068_v41 = vand.u32 4294901760, %v3294_v18  ;;  %v3314_v42 = vsub.f32 %v823_v27, %v3296_v15 }
  0x9f   : > { %1223 = vmatpush2.msra.mxu1 %v1222_v17  ;;  %906 = vmatpush2.msra.mxu0 %v3202_v34  ;;  %v3289_v17 = vand.u32 4294901760, %v824_v23  ;;  %v1227_v6 = vsub.f32 %v3274_v25, %v4049_v0  ;;  %v1233_v47 = vsub.f32 %v3280_v11, %v4297_v58  ;;  %v3316_v0 = vand.u32 4294901760, %v821_v46  ;;  %v819_v58 = vld [vmem:[#allocation7 + $0x180] sm:$0xff] }
  0xa0   : > { %908 = vmatprep.subr.mxu0 %v3204_v56  ;;  %4291 = vst [vmem:[#allocation65_spill] sm:$0xff] %v3287_v8  ;;  %4298 = vst [vmem:[#allocation71_spill] sm:$0xff] %v3314_v42  ;;  %v4300_v25 = vand.u32 4294901760, %v3287_v8  ;;  %v1245_v11 = vsub.f32 %v3294_v18, %v4068_v41  ;;  %v816_v18 = vld [vmem:[#allocation7 + $0x168] sm:$0xff] }
  0xa1   : > { %4292 = vst [vmem:[#allocation66_spill] sm:$0xff] %v3289_v17  ;;  %910 = vmatpush2.msra.mxu0 %v3214_v1  ;;  %v3304_v45 = vsub.f32 %v824_v23, %v3289_v17  ;;  %4299 = vst [vmem:[#allocation72_spill] sm:$0xff] %v3316_v0  ;;  %v1228_v23 = vand.u32 4294901760, %v1227_v6  ;;  %v1234_v27 = vand.u32 4294901760, %v1233_v47  ;;  %v3332_v6 = vsub.f32 %v821_v46, %v3316_v0  ;;  %v818_v1 = vld [vmem:[#allocation7 + $0x178] sm:$0xff] }
  0xa2   : > { %912 = vmatprep.subr.mxu0 %v3267_v31  ;;  %v1239_v31 = vsub.f32 %v3287_v8, %v4300_v25  ;;  %v4079_v47 = vand.u32 4294901760, %v3324_v62  ;;  %v3339_v8 = vand.u32 4294901760, %v820_v50  ;;  %v1246_v41 = vand.u32 4294901760, %v1245_v11 }
  0xa3   : > { %4295 = vst [vmem:[#allocation69_spill] sm:$0xff] %v3304_v45  ;;  %914 = vmatpush2.msra.mxu0 %v3270_v61  ;;  %v4071_v61 = vand.u32 4294901760, %v3304_v45  ;;  %4302 = vst [vmem:[#allocation74_spill] sm:$0xff] %v3332_v6  ;;  %1229 = vmatprep.subr.mxu1 %v1228_v23  ;;  %v4084_v23 = vand.u32 4294901760, %v3332_v6  ;;  %v3355_v11 = vand.u32 4294901760, %v818_v1 }
  0xa4   : > { %916 = vmatprep.subr.mxu0 %v3276_v49  ;;  %v4076_v49 = vand.u32 4294901760, %v3314_v42  ;;  %v1240_v25 = vand.u32 4294901760, %v1239_v31  ;;  %4303 = vst [vmem:[#allocation75_spill] sm:$0xff] %v3339_v8  ;;  %1235 = vmatpush2.msra.mxu1 %v1234_v27  ;;  %v3346_v31 = vand.u32 4294901760, %v819_v58  ;;  %v3353_v27 = vsub.f32 %v820_v50, %v3339_v8 }
  0xa5   : > { %918 = vmatpush2.msra.mxu0 %v3282_v19  ;;  %v1251_v48 = vsub.f32 %v3304_v45, %v4071_v61  ;;  %v817_v19 = vld [vmem:[#allocation7 + $0x170] sm:$0xff]  ;;  %v1263_v45 = vsub.f32 %v3324_v62, %v4079_v47  ;;  %4306 = vst [vmem:[#allocation78_spill] sm:$0xff] %v3355_v11  ;;  %v814_v47 = vld [vmem:[#allocation7 + $0x158] sm:$0xff] }
  0xa6   : > { %920 = vmatprep.subr.mxu0 %v3289_v17  ;;  %v1257_v46 = vsub.f32 %v3314_v42, %v4076_v49  ;;  %4304 = vst [vmem:[#allocation76_spill] sm:$0xff] %v3346_v31  ;;  %1241 = vmatprep.subr.mxu1 %v1240_v25  ;;  %4305 = vst [vmem:[#allocation77_spill] sm:$0xff] %v3353_v27  ;;  %v1269_v42 = vsub.f32 %v3332_v6, %v4084_v23  ;;  %v4089_v62 = vand.u32 4294901760, %v3353_v27 }
  0xa7   : > { %922 = vmatpush2.msra.mxu0 %v3296_v15  ;;  %v1252_v61 = vand.u32 4294901760, %v1251_v48  ;;  %v815_v15 = vld [vmem:[#allocation7 + $0x160] sm:$0xff]  ;;  %1247 = vmatpush2.msra.mxu1 %v1246_v41  ;;  %v3362_v25 = vsub.f32 %v819_v58, %v3346_v31  ;;  %v3364_v48 = vand.u32 4294901760, %v817_v19  ;;  %v1264_v50 = vand.u32 4294901760, %v1263_v45  ;;  %v812_v45 = vld [vmem:[#allocation7 + $0x148] sm:$0xff] }
  0xa8   : > { %924 = vmatprep.subr.mxu0 %v3306_v12  ;;  %v1258_v49 = vand.u32 4294901760, %v1257_v46  ;;  %v3371_v41 = vand.u32 4294901760, %v816_v18  ;;  %v813_v46 = vld [vmem:[#allocation7 + $0x150] sm:$0xff]  ;;  %v1270_v58 = vand.u32 4294901760, %v1269_v42  ;;  %v3388_v42 = vand.u32 4294901760, %v814_v47 }
  0xa9   : > { %926 = vmatpush2.msra.mxu0 %v3316_v0  ;;  %4307 = vst [vmem:[#allocation79_spill] sm:$0xff] %v3362_v25  ;;  %4308 = vst [vmem:[#allocation80_spill] sm:$0xff] %v3364_v48  ;;  %1253 = vmatprep.subr.mxu1 %v1252_v61  ;;  %v3369_v0 = vsub.f32 %v818_v1, %v3355_v11  ;;  %v4096_v23 = vand.u32 4294901760, %v3362_v25  ;;  %v3376_v6 = vsub.f32 %v817_v19, %v3364_v48 }
  0xaa   : > { %928 = vmatprep.subr.mxu0 %v3339_v8  ;;  %4310 = vst [vmem:[#allocation82_spill] sm:$0xff] %v3371_v41  ;;  %1259 = vmatpush2.msra.mxu1 %v1258_v49  ;;  %v3378_v8 = vand.u32 4294901760, %v815_v15  ;;  %v1275_v1 = vsub.f32 %v3353_v27, %v4089_v62  ;;  %v3386_v61 = vsub.f32 %v816_v18, %v3371_v41  ;;  %4314 = vst [vmem:[#allocation86_spill] sm:$0xff] %v3388_v42 }
  0xab   : > { %4309 = vst [vmem:[#allocation81_spill] sm:$0xff] %v3369_v0  ;;  %930 = vmatpush2.msra.mxu0 %v3346_v31  ;;  %4311 = vst [vmem:[#allocation83_spill] sm:$0xff] %v3376_v6  ;;  %1265 = vmatprep.subr.mxu1 %v1264_v50  ;;  %v1281_v49 = vsub.f32 %v3362_v25, %v4096_v23  ;;  %v4107_v19 = vand.u32 4294901760, %v3376_v6  ;;  %v3398_v62 = vand.u32 4294901760, %v813_v46  ;;  %v4317_v27 = vand.u32 4294901760, %v3369_v0  ;;  %v811_v23 = vld [vmem:[#allocation7 + $0x140] sm:$0xff] }
  0xac   : > { %4312 = vst [vmem:[#allocation84_spill] sm:$0xff] %v3378_v8  ;;  %932 = vmatprep.subr.mxu0 %v3355_v11  ;;  %4313 = vst [vmem:[#allocation85_spill] sm:$0xff] %v3386_v61  ;;  %1271 = vmatpush2.msra.mxu1 %v1270_v58  ;;  %v3396_v50 = vsub.f32 %v815_v15, %v3378_v8  ;;  %v1276_v18 = vand.u32 4294901760, %v1275_v1  ;;  %v4110_v58 = vand.u32 4294901760, %v3386_v61  ;;  %v810_v31 = vld [vmem:[#allocation7 + $0x138] sm:$0xff] }
  0xad   : > { %934 = vmatpush2.msra.mxu0 %v3364_v48  ;;  %4316 = vst [vmem:[#allocation88_spill] sm:$0xff] %v3398_v62  ;;  %v1287_v48 = vsub.f32 %v3369_v0, %v4317_v27  ;;  %v3406_v11 = vsub.f32 %v814_v47, %v3388_v42  ;;  %v1282_v15 = vand.u32 4294901760, %v1281_v49  ;;  %v1293_v25 = vsub.f32 %v3376_v6, %v4107_v19  ;;  %v808_v6 = vld [vmem:[#allocation7 + $0x128] sm:$0xff] }
  0xae   : > { %4315 = vst [vmem:[#allocation87_spill] sm:$0xff] %v3396_v50  ;;  %936 = vmatprep.subr.mxu0 %v3371_v41  ;;  %v4115_v41 = vand.u32 4294901760, %v3396_v50  ;;  %v3414_v1 = vsub.f32 %v813_v46, %v3398_v62  ;;  %1277 = vmatprep.subr.mxu1 %v1276_v18  ;;  %v1299_v47 = vsub.f32 %v3386_v61, %v4110_v58  ;;  %v3421_v0 = vand.u32 4294901760, %v812_v45 }
  0xaf   : > { %4318 = vst [vmem:[#allocation89_spill] sm:$0xff] %v3406_v11  ;;  %938 = vmatpush2.msra.mxu0 %v3378_v8  ;;  %v1288_v27 = vand.u32 4294901760, %v1287_v48  ;;  %v4118_v49 = vand.u32 4294901760, %v3406_v11  ;;  %v809_v8 = vld [vmem:[#allocation7 + $0x130] sm:$0xff]  ;;  %1283 = vmatpush2.msra.mxu1 %v1282_v15  ;;  %v1294_v19 = vand.u32 4294901760, %v1293_v25  ;;  %v3428_v48 = vand.u32 4294901760, %v811_v23 }
  0xb0   : > { %4319 = vst [vmem:[#allocation90_spill] sm:$0xff] %v3414_v1  ;;  %940 = vmatprep.subr.mxu0 %v3388_v42  ;;  %4320 = vst [vmem:[#allocation91_spill] sm:$0xff] %v3421_v0  ;;  %v1305_v46 = vsub.f32 %v3396_v50, %v4115_v41  ;;  %v4123_v18 = vand.u32 4294901760, %v3414_v1  ;;  %v1300_v58 = vand.u32 4294901760, %v1299_v47  ;;  %v3434_v42 = vsub.f32 %v812_v45, %v3421_v0  ;;  %v807_v25 = vld [vmem:[#allocation7 + $0x120] sm:$0xff] }
  0xb1   : > { %942 = vmatpush2.msra.mxu0 %v3398_v62  ;;  %4321 = vst [vmem:[#allocation92_spill] sm:$0xff] %v3428_v48  ;;  %1289 = vmatprep.subr.mxu1 %v1288_v27  ;;  %v1311_v61 = vsub.f32 %v3406_v11, %v4118_v49  ;;  %v3436_v15 = vand.u32 4294901760, %v810_v31  ;;  %v3443_v27 = vsub.f32 %v811_v23, %v3428_v48  ;;  %v3445_v47 = vand.u32 4294901760, %v809_v8  ;;  %v806_v49 = vld [vmem:[#allocation7 + $0x118] sm:$0xff] }
  0xb2   : > { %4322 = vst [vmem:[#allocation93_spill] sm:$0xff] %v3434_v42  ;;  %944 = vmatprep.subr.mxu0 %v3421_v0  ;;  %1295 = vmatpush2.msra.mxu1 %v1294_v19  ;;  %v1306_v41 = vand.u32 4294901760, %v1305_v46  ;;  %v1317_v50 = vsub.f32 %v3414_v1, %v4123_v18  ;;  %v4128_v11 = vand.u32 4294901760, %v3434_v42  ;;  %v3452_v19 = vand.u32 4294901760, %v808_v6  ;;  %v805_v46 = vld [vmem:[#allocation7 + $0x110] sm:$0xff] }
  0xb3   : > { %4323 = vst [vmem:[#allocation94_spill] sm:$0xff] %v3436_v15  ;;  %4324 = vst [vmem:[#allocation95_spill] sm:$0xff] %v3443_v27  ;;  %946 = vmatpush2.msra.mxu0 %v3428_v48  ;;  %1301 = vmatprep.subr.mxu1 %v1300_v58  ;;  %v1312_v45 = vand.u32 4294901760, %v1311_v61  ;;  %v3450_v0 = vsub.f32 %v810_v31, %v3436_v15  ;;  %v4135_v18 = vand.u32 4294901760, %v3443_v27  ;;  %v3459_v48 = vand.u32 4294901760, %v807_v25  ;;  %v804_v61 = vld [vmem:[#allocation7 + $0x108] sm:$0xff] }
  0xb4   : > { %4325 = vst [vmem:[#allocation96_spill] sm:$0xff] %v3445_v47  ;;  %4327 = vst [vmem:[#allocation98_spill] sm:$0xff] %v3452_v19  ;;  %948 = vmatprep.subr.mxu0 %v3436_v15  ;;  %1307 = vmatpush2.msra.mxu1 %v1306_v41  ;;  %v1318_v23 = vand.u32 4294901760, %v1317_v50  ;;  %v3457_v1 = vsub.f32 %v809_v8, %v3445_v47  ;;  %v1323_v31 = vsub.f32 %v3434_v42, %v4128_v11 }
  0xb5   : > { %4326 = vst [vmem:[#allocation97_spill] sm:$0xff] %v3450_v0  ;;  %4329 = vst [vmem:[#allocation100_spill] sm:$0xff] %v3459_v48  ;;  %950 = vmatpush2.msra.mxu0 %v3445_v47  ;;  %1313 = vmatprep.subr.mxu1 %v1312_v45  ;;  %v3467_v58 = vsub.f32 %v808_v6, %v3452_v19  ;;  %v3469_v41 = vand.u32 4294901760, %v806_v49  ;;  %v1329_v8 = vsub.f32 %v3443_v27, %v4135_v18  ;;  %v803_v18 = vld [vmem:[#allocation7 + $0x100] sm:$0xff] }
  0xb6   : > { %4328 = vst [vmem:[#allocation99_spill] sm:$0xff] %v3457_v1  ;;  %952 = vmatprep.subr.mxu0 %v3452_v19  ;;  %1319 = vmatpush2.msra.mxu1 %v1318_v23  ;;  %v4144_v50 = vand.u32 4294901760, %v3457_v1  ;;  %v3477_v45 = vsub.f32 %v807_v25, %v3459_v48  ;;  %v3479_v11 = vand.u32 4294901760, %v805_v46  ;;  %v1324_v6 = vand.u32 4294901760, %v1323_v31 }
  0xb7   : > { %4330 = vst [vmem:[#allocation101_spill] sm:$0xff] %v3467_v58  ;;  %4331 = vst [vmem:[#allocation102_spill] sm:$0xff] %v3469_v41  ;;  %954 = vmatpush2.msra.mxu0 %v3459_v48  ;;  %v4334_v42 = vand.u32 4294901760, %v3450_v0  ;;  %v4147_v23 = vand.u32 4294901760, %v3467_v58  ;;  %v3487_v47 = vsub.f32 %v806_v49, %v3469_v41  ;;  %v1330_v25 = vand.u32 4294901760, %v1329_v8 }
  0xb8   : > { %4332 = vst [vmem:[#allocation103_spill] sm:$0xff] %v3477_v45  ;;  %4333 = vst [vmem:[#allocation104_spill] sm:$0xff] %v3479_v11  ;;  %956 = vmatprep.subr.mxu0 %v3469_v41  ;;  %v1341_v27 = vsub.f32 %v3457_v1, %v4144_v50  ;;  %v4148_v48 = vand.u32 4294901760, %v3477_v45  ;;  %v3495_v31 = vsub.f32 %v805_v46, %v3479_v11  ;;  %1325 = vmatprep.subr.mxu1 %v1324_v6 }
  0xb9   : > { %v1335_v19 = vsub.f32 %v3450_v0, %v4334_v42  ;;  %4335 = vst [vmem:[#allocation105_spill] sm:$0xff] %v3487_v47  ;;  %958 = vmatpush2.msra.mxu0 %v3479_v11  ;;  %v1347_v49 = vsub.f32 %v3467_v58, %v4147_v23  ;;  %v4150_v0 = vand.u32 4294901760, %v3487_v47  ;;  %v3502_v8 = vand.u32 4294901760, %v804_v61  ;;  %1331 = vmatpush2.msra.mxu1 %v1330_v25 }
  0xba   : > { %4336 = vst [vmem:[#allocation106_spill] sm:$0xff] %v3495_v31  ;;  %v1342_v41 = vand.u32 4294901760, %v1341_v27  ;;  %v1353_v50 = vsub.f32 %v3477_v45, %v4148_v48  ;;  %v4149_v46 = vand.u32 4294901760, %v3495_v31  ;;  %v3508_v1 = vand.u32 4294901760, %v803_v18 }
  0xbb   : > { %v1336_v42 = vand.u32 4294901760, %v1335_v19  ;;  %4337 = vst [vmem:[#allocation107_spill] sm:$0xff] %v3502_v8  ;;  %v1348_v19 = vand.u32 4294901760, %v1347_v49  ;;  %v1359_v6 = vsub.f32 %v3487_v47, %v4150_v0  ;;  %v3514_v23 = vsub.f32 %v804_v61, %v3502_v8  ;;  %960 = vmatprep.subr.mxu0 %v3502_v8 }
  0xbc   : > { %4338 = vst [vmem:[#allocation108_spill] sm:$0xff] %v3508_v1  ;;  %v1354_v27 = vand.u32 4294901760, %v1353_v50  ;;  %v1365_v25 = vsub.f32 %v3495_v31, %v4149_v46  ;;  %v3521_v48 = vsub.f32 %v803_v18, %v3508_v1  ;;  %962 = vmatpush2.msra.mxu0 %v3508_v1 }
  0xbd   : > { %1337 = vmatprep.subr.mxu1 %v1336_v42  ;;  %4339 = vst [vmem:[#allocation109_spill] sm:$0xff] %v3514_v23  ;;  %v1360_v42 = vand.u32 4294901760, %v1359_v6  ;;  %v4156_v49 = vand.u32 4294901760, %v3514_v23  ;;  %1399 = vmatprep.subr.mxu0 %v2758_v29 }
  0xbe   : > { %1343 = vmatpush2.msra.mxu1 %v1342_v41  ;;  %4340 = vst [vmem:[#allocation110_spill] sm:$0xff] %v3521_v48  ;;  %v1366_v61 = vand.u32 4294901760, %v1365_v25  ;;  %v4163_v41 = vand.u32 4294901760, %v3521_v48 }
  0xbf   : > { %1349 = vmatprep.subr.mxu1 %v1348_v19  ;;  %v1371_v50 = vsub.f32 %v3514_v23, %v4156_v49 }
  0xc0   : > { %1355 = vmatpush2.msra.mxu1 %v1354_v27  ;;  %v1377_v18 = vsub.f32 %v3521_v48, %v4163_v41 }
  0xc1   : > { %1361 = vmatprep.subr.mxu1 %v1360_v42  ;;  %v1372_v19 = vand.u32 4294901760, %v1371_v50 }
  0xc2   : > { %1367 = vmatpush2.msra.mxu1 %v1366_v61  ;;  %v1378_v6 = vand.u32 4294901760, %v1377_v18 }
  0xc3   : > { %1373 = vmatprep.subr.mxu1 %v1372_v19 }
  0xc4   : > { %1379 = vmatpush2.msra.mxu1 %v1378_v6 }
  0xc5   : > { %1611 = vmatprep.subr.mxu1 %v2741_v21 }
 0x127   : > { %v306_v27 = vpop.f32.mrf.mxu0 }
 0x129   : > { %v308_v25 = vpop.f32.mrf.mxu0  ;;  %v409_v46 = vpop.f32.mrf.mxu1 }
 0x12a   : > { %v410_v61 = vadd.f32 %v409_v46, %v306_v27 }
 0x12b   : > { %v317_v0 = vpop.f32.mrf.mxu0  ;;  %v411_v42 = vpop.f32.mrf.mxu1 }
 0x12c   : > { %v412_v58 = vadd.f32 %v411_v42, %v308_v25 }
 0x12d   : > { %v319_v29 = vpop.f32.mrf.mxu0  ;;  %v416_v31 = vpop.f32.mrf.mxu1 }
 0x12e   : > { %v417_v19 = vadd.f32 %v416_v31, %v317_v0 }
 0x12f   : > { %v497_v47 = vpop.f32.mrf.mxu0  ;;  %v418_v49 = vpop.f32.mrf.mxu1 }
 0x130   : > { %v498_v41 = vadd.f32 %v497_v47, %v410_v61  ;;  %v419_v1 = vadd.f32 %v418_v49, %v319_v29 }
 0x131   : > { %v499_v23 = vpop.f32.mrf.mxu0  ;;  %v583_v45 = vpop.f32.mrf.mxu1 }
 0x132   : > { %v500_v6 = vadd.f32 %v499_v23, %v412_v58  ;;  %v584_v8 = vadd.f32 %v583_v45, %v498_v41 }
 0x133   : > { %v505_v50 = vpop.f32.mrf.mxu0  ;;  %v585_v18 = vpop.f32.mrf.mxu1 }
 0x134   : > { %v506_v11 = vadd.f32 %v505_v50, %v417_v19  ;;  %v586_v12 = vadd.f32 %v585_v18, %v500_v6 }
 0x135   : > { %v507_v48 = vpop.f32.mrf.mxu0  ;;  %v592_v21 = vpop.f32.mrf.mxu1 }
 0x136   : > { %v508_v17 = vadd.f32 %v507_v48, %v419_v1  ;;  %v593_v27 = vadd.f32 %v592_v21, %v506_v11 }
 0x137   : > { %v676_v15 = vpop.f32.mrf.mxu0  ;;  %v594_v62 = vpop.f32.mrf.mxu1 }
 0x138   : > { %v677_v56 = vadd.f32 %v676_v15, %v584_v8  ;;  %v595_v61 = vadd.f32 %v594_v62, %v508_v17 }
 0x139   : > { %v678_v34 = vpop.f32.mrf.mxu0  ;;  %v759_v46 = vpop.f32.mrf.mxu1 }
 0x13a   : > { %v679_v16 = vadd.f32 %v678_v34, %v586_v12  ;;  %v760_v25 = vadd.f32 %v759_v46, %v677_v56 }
 0x13b   : > { %v683_v47 = vpop.f32.mrf.mxu0  ;;  %v761_v42 = vpop.f32.mrf.mxu1 }
 0x13c   : > { %v3534_v0 = vand.u32 4294901760, %v760_v25  ;;  %v684_v58 = vadd.f32 %v683_v47, %v593_v27  ;;  %v762_v23 = vadd.f32 %v761_v42, %v679_v16  ;;  %v4344_v47 = vld [vmem:[#allocation14_spill] sm:$0xff]  ;;  %v4345_v42 = vld [vmem:[#allocation21_spill] sm:$0xff] }
 0x13d   : > { %v685_v29 = vpop.f32.mrf.mxu0  ;;  %v766_v45 = vpop.f32.mrf.mxu1 }
 0x13e   : > { %4341 = vst [vmem:[#allocation111_spill] sm:$0xff] %v3534_v0  ;;  %v3537_v31 = vsub.f32 %v760_v25, %v3534_v0  ;;  %v3539_v49 = vand.u32 4294901760, %v762_v23  ;;  %v686_v1 = vadd.f32 %v685_v29, %v595_v61  ;;  %v767_v48 = vadd.f32 %v766_v45, %v684_v58  ;;  %v4346_v58 = vld [vmem:[#allocation15_spill] sm:$0xff]  ;;  %v4348_v29 = vld [vmem:[#allocation17_spill] sm:$0xff]  ;;  %v4349_v45 = vld [vmem:[#allocation18_spill] sm:$0xff] }
 0x13f   : > { %v768_v15 = vpop.f32.mrf.mxu1 }
 0x140   : > { %v4189_v21 = vand.u32 4294901760, %v3537_v31  ;;  %v964_v12 = vsub.f32 %v762_v23, %v3539_v49  ;;  %v3543_v34 = vand.u32 4294901760, %v767_v48  ;;  %v769_v62 = vadd.f32 %v768_v15, %v686_v1  ;;  %1381 = vmatprep.mubr.f32.mxu1 %v3539_v49  ;;  %v4347_v23 = vld [vmem:[#allocation16_spill] sm:$0xff]  ;;  %v4350_v1 = vld [vmem:[#allocation19_spill] sm:$0xff]  ;;  %v4352_v15 = vld [vmem:[#allocation22_spill] sm:$0xff] }
 0x141   : > { %1383 = vmatmul.mubr.f32.vlgmr.msra.gmra.mxu1 %v3534_v0  ;;  %v4369_v0 = vld [vmem:[#allocation51_spill] sm:$0xff] }
 0x142   : > { %4342 = vst [vmem:[#allocation112_spill] sm:$0xff] %v3543_v34  ;;  %v3548_v16 = vsub.f32 %v767_v48, %v3543_v34  ;;  %v3550_v56 = vand.u32 4294901760, %v769_v62  ;;  %1613 = vmatpush1.msra.mxu1 %v2743_v22  ;;  %v965_v17 = vand.u32 4294901760, %v964_v12  ;;  %v972_v11 = vsub.f32 %v3537_v31, %v4189_v21  ;;  %v4351_v48 = vld [vmem:[#allocation20_spill] sm:$0xff] }
 0x143   : > { %1615 = vmatprep.subr.mxu1 %v2786_v52  ;;  %v4366_v21 = vld [vmem:[#allocation36_spill] sm:$0xff] }
 0x144   : > { %4343 = vst [vmem:[#allocation113_spill] sm:$0xff] %v3550_v56  ;;  %v3558_v8 = vsub.f32 %v769_v62, %v3550_v56  ;;  %1617 = vmatpush1.msra.mxu1 %v2788_v53  ;;  %1389 = vmatprep.mubr.f32.mxu1 %v3550_v56  ;;  %v966_v41 = vsub.f32 %v964_v12, %v965_v17  ;;  %v4187_v50 = vand.u32 4294901760, %v3548_v16  ;;  %v973_v6 = vand.u32 4294901760, %v972_v11  ;;  %v4353_v62 = vld [vmem:[#allocation23_spill] sm:$0xff]  ;;  %v4356_v11 = vld [vmem:[#allocation26_spill] sm:$0xff] }
 0x145   : > { %1619 = vmatprep.subr.mxu1 %v2790_v54  ;;  %1391 = vmatmul.mubr.f32.gmra.mxu1 %v3543_v34  ;;  %v4367_v34 = vld [vmem:[#allocation37_spill] sm:$0xff]  ;;  %v4368_v56 = vld [vmem:[#allocation39_spill] sm:$0xff] }
 0x146   : > { %1621 = vmatpush1.msra.mxu1 %v2797_v59  ;;  %1741 = vmatprep.mubr.f32.mxu1 %v965_v17  ;;  %v967_v18 = vand.u32 4294901760, %v966_v41  ;;  %v4188_v19 = vand.u32 4294901760, %v3558_v8  ;;  %v988_v27 = vsub.f32 %v3548_v16, %v4187_v50  ;;  %v4355_v17 = vld [vmem:[#allocation25_spill] sm:$0xff]  ;;  %v4357_v41 = vld [vmem:[#allocation27_spill] sm:$0xff]  ;;  %v4364_v50 = vld [vmem:[#allocation34_spill] sm:$0xff] }
 0x147   : > { %1623 = vmatprep.subr.mxu1 %v2808_v63 }
 0x148   : > { %1625 = vmatpush1.msra.mxu1 %v2814_v2  ;;  %968 = vmatprep.mubr.f32.mxu0 %v967_v18  ;;  %v982_v46 = vsub.f32 %v3558_v8, %v4188_v19  ;;  %v989_v61 = vand.u32 4294901760, %v988_v27  ;;  %v4358_v18 = vld [vmem:[#allocation28_spill] sm:$0xff]  ;;  %v4361_v27 = vld [vmem:[#allocation31_spill] sm:$0xff] }
 0x149   : > { %1627 = vmatprep.subr.mxu1 %v2816_v3  ;;  %974 = vmatmul.mubr.f32.vlgmr.msra.gmra.mxu0 %v973_v6  ;;  %v4359_v6 = vld [vmem:[#allocation29_spill] sm:$0xff]  ;;  %v4365_v19 = vld [vmem:[#allocation35_spill] sm:$0xff] }
 0x14a   : > { %1402 = vmatpush1.msra.mxu0 %v2761_v30  ;;  %1629 = vmatpush1.msra.mxu1 %v2818_v7  ;;  %v983_v25 = vand.u32 4294901760, %v982_v46  ;;  %v4360_v46 = vld [vmem:[#allocation30_spill] sm:$0xff] }
 0x14b   : > { %1405 = vmatprep.subr.mxu0 %v2800_v60  ;;  %1631 = vmatprep.subr.mxu1 %v2881_v55 }
 0x14c   : > { %1408 = vmatpush1.msra.mxu0 %v4344_v47  ;;  %1633 = vmatpush1.msra.mxu1 %v4345_v42 }
 0x14d   : > { %984 = vmatprep.mubr.f32.mxu0 %v983_v25  ;;  %1411 = vmatprep.subr.mxu0 %v4346_v58  ;;  %v4362_v25 = vld [vmem:[#allocation32_spill] sm:$0xff] }
 0x14e   : > { %1635 = vmatprep.subr.mxu1 %v2885_v57  ;;  %990 = vmatmul.mubr.f32.gmra.mxu0 %v989_v61  ;;  %v4363_v61 = vld [vmem:[#allocation33_spill] sm:$0xff] }
 0x14f   : > { %1414 = vmatpush1.msra.mxu0 %v4347_v23  ;;  %1637 = vmatpush1.msra.mxu1 %v2905_v37 }
 0x150   : > { %1417 = vmatprep.subr.mxu0 %v4348_v29  ;;  %1591 = vmatprep.mubr.f32.mxu0 %v964_v12  ;;  %v4354_v12 = vld [vmem:[#allocation24_spill] sm:$0xff] }
 0x151   : > { %1639 = vmatprep.subr.mxu1 %v2919_v35  ;;  %1420 = vmatpush1.msra.mxu0 %v4349_v45 }
 0x152   : > { %1641 = vmatpush1.msra.mxu1 %v2927_v24  ;;  %1423 = vmatprep.subr.mxu0 %v4350_v1 }
 0x153   : > { %1643 = vmatprep.subr.mxu1 %v2929_v32  ;;  %1426 = vmatpush1.msra.mxu0 %v4351_v48 }
 0x154   : > { %1645 = vmatpush1.msra.mxu1 %v2931_v40  ;;  %1429 = vmatprep.subr.mxu0 %v4352_v15 }
 0x155   : > { %1647 = vmatprep.subr.mxu1 %v3003_v26  ;;  %1432 = vmatpush1.msra.mxu0 %v4353_v62 }
 0x156   : > { %1649 = vmatpush1.msra.mxu1 %v3005_v44  ;;  %1435 = vmatprep.subr.mxu0 %v4354_v12 }
 0x157   : > { %1651 = vmatprep.subr.mxu1 %v3007_v28  ;;  %1438 = vmatpush1.msra.mxu0 %v4355_v17 }
 0x158   : > { %1653 = vmatpush1.msra.mxu1 %v3027_v33  ;;  %1441 = vmatprep.subr.mxu0 %v4356_v11 }
 0x159   : > { %1655 = vmatprep.subr.mxu1 %v3039_v43  ;;  %1444 = vmatpush1.msra.mxu0 %v4357_v41 }
 0x15a   : > { %1657 = vmatpush1.msra.mxu1 %v3045_v14  ;;  %1447 = vmatprep.subr.mxu0 %v4358_v18 }
 0x15b   : > { %1659 = vmatprep.subr.mxu1 %v3047_v51  ;;  %1450 = vmatpush1.msra.mxu0 %v4359_v6 }
 0x15c   : > { %1661 = vmatpush1.msra.mxu1 %v3049_v5  ;;  %1453 = vmatprep.subr.mxu0 %v4360_v46 }
 0x15d   : > { %1663 = vmatprep.subr.mxu1 %v3115_v38  ;;  %1456 = vmatpush1.msra.mxu0 %v4361_v27 }
 0x15e   : > { %1665 = vmatpush1.msra.mxu1 %v3117_v10  ;;  %1459 = vmatprep.subr.mxu0 %v4362_v25 }
 0x15f   : > { %1667 = vmatprep.subr.mxu1 %v3119_v39  ;;  %1462 = vmatpush1.msra.mxu0 %v4363_v61 }
 0x160   : > { %1669 = vmatpush1.msra.mxu1 %v3129_v4  ;;  %1465 = vmatprep.subr.mxu0 %v4364_v50  ;;  %v4370_v4 = vld [vmem:[#allocation40_spill] sm:$0xff] }
 0x161   : > { %1671 = vmatprep.subr.mxu1 %v3141_v20  ;;  %1468 = vmatpush1.msra.mxu0 %v4365_v19  ;;  %v4371_v50 = vld [vmem:[#allocation52_spill] sm:$0xff]  ;;  %v4372_v20 = vld [vmem:[#allocation41_spill] sm:$0xff] }
 0x162   : > { %1673 = vmatpush1.msra.mxu1 %v3147_v13  ;;  %1471 = vmatprep.subr.mxu0 %v4366_v21  ;;  %v4373_v19 = vld [vmem:[#allocation53_spill] sm:$0xff]  ;;  %v4374_v13 = vld [vmem:[#allocation43_spill] sm:$0xff]  ;;  %v4375_v21 = vld [vmem:[#allocation54_spill] sm:$0xff] }
 0x163   : > { %1675 = vmatprep.subr.mxu1 %v3149_v36  ;;  %1474 = vmatpush1.msra.mxu0 %v4367_v34  ;;  %v4376_v36 = vld [vmem:[#allocation47_spill] sm:$0xff] }
 0x164   : > { %1677 = vmatpush2.msra.mxu1 %v3151_v9  ;;  %1477 = vmatprep.subr.mxu0 %v4368_v56  ;;  %v4377_v34 = vld [vmem:[#allocation59_spill] sm:$0xff]  ;;  %v4378_v9 = vld [vmem:[#allocation48_spill] sm:$0xff] }
 0x165   : > { %1679 = vmatprep.subr.mxu1 %v4369_v0  ;;  %1480 = vmatpush1.msra.mxu0 %v4370_v4  ;;  %v4379_v56 = vld [vmem:[#allocation60_spill] sm:$0xff]  ;;  %v4380_v0 = vld [vmem:[#allocation49_spill] sm:$0xff]  ;;  %v4381_v4 = vld [vmem:[#allocation62_spill] sm:$0xff] }
 0x166   : > { %1681 = vmatpush2.msra.mxu1 %v4371_v50  ;;  %1483 = vmatprep.subr.mxu0 %v4372_v20  ;;  %v4382_v50 = vld [vmem:[#allocation50_spill] sm:$0xff]  ;;  %v4383_v20 = vld [vmem:[#allocation64_spill] sm:$0xff] }
 0x167   : > { %1683 = vmatprep.subr.mxu1 %v4373_v19  ;;  %1486 = vmatpush1.msra.mxu0 %v4374_v13  ;;  %v4384_v19 = vld [vmem:[#allocation55_spill] sm:$0xff]  ;;  %v4385_v13 = vld [vmem:[#allocation66_spill] sm:$0xff] }
 0x168   : > { %1685 = vmatpush2.msra.mxu1 %v4375_v21  ;;  %1489 = vmatprep.subr.mxu0 %v4376_v36  ;;  %v4386_v21 = vld [vmem:[#allocation56_spill] sm:$0xff] }
 0x169   : > { %1687 = vmatprep.subr.mxu1 %v4377_v34  ;;  %1492 = vmatpush1.msra.mxu0 %v4378_v9  ;;  %v4387_v36 = vld [vmem:[#allocation68_spill] sm:$0xff]  ;;  %v4388_v34 = vld [vmem:[#allocation57_spill] sm:$0xff]  ;;  %v4389_v9 = vld [vmem:[#allocation70_spill] sm:$0xff] }
 0x16a   : > { %1689 = vmatpush2.msra.mxu1 %v4379_v56  ;;  %1495 = vmatprep.subr.mxu0 %v4380_v0  ;;  %v4390_v56 = vld [vmem:[#allocation58_spill] sm:$0xff]  ;;  %v4391_v0 = vld [vmem:[#allocation72_spill] sm:$0xff] }
 0x16b   : > { %1691 = vmatprep.subr.mxu1 %v4381_v4  ;;  %1498 = vmatpush2.msra.mxu0 %v4382_v50  ;;  %v4392_v4 = vld [vmem:[#allocation61_spill] sm:$0xff]  ;;  %v4393_v50 = vld [vmem:[#allocation75_spill] sm:$0xff] }
 0x16c   : > { %1693 = vmatpush2.msra.mxu1 %v4383_v20  ;;  %1501 = vmatprep.subr.mxu0 %v4384_v19  ;;  %v4394_v20 = vld [vmem:[#allocation63_spill] sm:$0xff]  ;;  %v4395_v19 = vld [vmem:[#allocation76_spill] sm:$0xff] }
 0x16d   : > { %1695 = vmatprep.subr.mxu1 %v4385_v13  ;;  %1504 = vmatpush2.msra.mxu0 %v4386_v21  ;;  %v4396_v13 = vld [vmem:[#allocation65_spill] sm:$0xff]  ;;  %v4397_v21 = vld [vmem:[#allocation78_spill] sm:$0xff] }
 0x16e   : > { %1697 = vmatpush2.msra.mxu1 %v4387_v36  ;;  %1507 = vmatprep.subr.mxu0 %v4388_v34  ;;  %v4398_v36 = vld [vmem:[#allocation67_spill] sm:$0xff]  ;;  %v4399_v34 = vld [vmem:[#allocation80_spill] sm:$0xff] }
 0x16f   : > { %1699 = vmatprep.subr.mxu1 %v4389_v9  ;;  %1510 = vmatpush2.msra.mxu0 %v4390_v56  ;;  %v4400_v9 = vld [vmem:[#allocation69_spill] sm:$0xff]  ;;  %v4401_v56 = vld [vmem:[#allocation82_spill] sm:$0xff] }
 0x170   : > { %1701 = vmatpush2.msra.mxu1 %v4391_v0  ;;  %1513 = vmatprep.subr.mxu0 %v4392_v4  ;;  %v4402_v0 = vld [vmem:[#allocation71_spill] sm:$0xff]  ;;  %v4403_v4 = vld [vmem:[#allocation84_spill] sm:$0xff] }
 0x171   : > { %1703 = vmatprep.subr.mxu1 %v4393_v50  ;;  %1516 = vmatpush2.msra.mxu0 %v4394_v20  ;;  %v4404_v50 = vld [vmem:[#allocation73_spill] sm:$0xff]  ;;  %v4405_v20 = vld [vmem:[#allocation86_spill] sm:$0xff] }
 0x172   : > { %1705 = vmatpush2.msra.mxu1 %v4395_v19  ;;  %1519 = vmatprep.subr.mxu0 %v4396_v13  ;;  %v4406_v19 = vld [vmem:[#allocation74_spill] sm:$0xff]  ;;  %v4407_v13 = vld [vmem:[#allocation88_spill] sm:$0xff] }
 0x173   : > { %1707 = vmatprep.subr.mxu1 %v4397_v21  ;;  %1522 = vmatpush2.msra.mxu0 %v4398_v36  ;;  %v4408_v21 = vld [vmem:[#allocation77_spill] sm:$0xff]  ;;  %v4409_v36 = vld [vmem:[#allocation91_spill] sm:$0xff] }
 0x174   : > { %1709 = vmatpush2.msra.mxu1 %v4399_v34  ;;  %1525 = vmatprep.subr.mxu0 %v4400_v9  ;;  %v4410_v34 = vld [vmem:[#allocation79_spill] sm:$0xff]  ;;  %v4411_v9 = vld [vmem:[#allocation92_spill] sm:$0xff] }
 0x175   : > { %1711 = vmatprep.subr.mxu1 %v4401_v56  ;;  %1528 = vmatpush2.msra.mxu0 %v4402_v0  ;;  %v4412_v56 = vld [vmem:[#allocation81_spill] sm:$0xff]  ;;  %v4413_v0 = vld [vmem:[#allocation94_spill] sm:$0xff] }
 0x176   : > { %1713 = vmatpush2.msra.mxu1 %v4403_v4  ;;  %1531 = vmatprep.subr.mxu0 %v4404_v50  ;;  %v4414_v4 = vld [vmem:[#allocation83_spill] sm:$0xff]  ;;  %v4415_v50 = vld [vmem:[#allocation96_spill] sm:$0xff] }
 0x177   : > { %1715 = vmatprep.subr.mxu1 %v4405_v20  ;;  %1534 = vmatpush2.msra.mxu0 %v4406_v19  ;;  %v4416_v20 = vld [vmem:[#allocation85_spill] sm:$0xff]  ;;  %v4417_v19 = vld [vmem:[#allocation98_spill] sm:$0xff] }
 0x178   : > { %1717 = vmatpush2.msra.mxu1 %v4407_v13  ;;  %1537 = vmatprep.subr.mxu0 %v4408_v21  ;;  %v4418_v13 = vld [vmem:[#allocation87_spill] sm:$0xff]  ;;  %v4419_v21 = vld [vmem:[#allocation100_spill] sm:$0xff] }
 0x179   : > { %1719 = vmatprep.subr.mxu1 %v4409_v36  ;;  %1540 = vmatpush2.msra.mxu0 %v4410_v34  ;;  %v4420_v36 = vld [vmem:[#allocation89_spill] sm:$0xff]  ;;  %v4421_v34 = vld [vmem:[#allocation102_spill] sm:$0xff] }
 0x17a   : > { %1721 = vmatpush2.msra.mxu1 %v4411_v9  ;;  %1543 = vmatprep.subr.mxu0 %v4412_v56  ;;  %v4422_v9 = vld [vmem:[#allocation90_spill] sm:$0xff]  ;;  %v4423_v56 = vld [vmem:[#allocation104_spill] sm:$0xff] }
 0x17b   : > { %1723 = vmatprep.subr.mxu1 %v4413_v0  ;;  %1546 = vmatpush2.msra.mxu0 %v4414_v4  ;;  %v4424_v0 = vld [vmem:[#allocation93_spill] sm:$0xff]  ;;  %v4425_v4 = vld [vmem:[#allocation107_spill] sm:$0xff] }
 0x17c   : > { %1725 = vmatpush2.msra.mxu1 %v4415_v50  ;;  %1549 = vmatprep.subr.mxu0 %v4416_v20  ;;  %v4426_v50 = vld [vmem:[#allocation95_spill] sm:$0xff]  ;;  %v4427_v20 = vld [vmem:[#allocation108_spill] sm:$0xff] }
 0x17d   : > { %1727 = vmatprep.subr.mxu1 %v4417_v19  ;;  %1552 = vmatpush2.msra.mxu0 %v4418_v13  ;;  %v4428_v19 = vld [vmem:[#allocation97_spill] sm:$0xff] }
 0x17e   : > { %1729 = vmatpush2.msra.mxu1 %v4419_v21  ;;  %1555 = vmatprep.subr.mxu0 %v4420_v36  ;;  %v4429_v21 = vand.u32 4294901760, %v3537_v31  ;;  %v4430_v36 = vld [vmem:[#allocation12_spill] sm:$0xff] }
 0x17f   : > { %1731 = vmatprep.subr.mxu1 %v4421_v34  ;;  %1558 = vmatpush2.msra.mxu0 %v4422_v9  ;;  %v4431_v34 = vld [vmem:[#allocation99_spill] sm:$0xff]  ;;  %v4432_v9 = vand.u32 4294901760, %v3558_v8 }
 0x180   : > { %1733 = vmatpush2.msra.mxu1 %v4423_v56  ;;  %1561 = vmatprep.subr.mxu0 %v4424_v0  ;;  %v4433_v0 = vld [vmem:[#allocation101_spill] sm:$0xff] }
 0x181   : > { %1735 = vmatprep.subr.mxu1 %v4425_v4  ;;  %1564 = vmatpush2.msra.mxu0 %v4426_v50  ;;  %v4434_v50 = vld [vmem:[#allocation103_spill] sm:$0xff] }
 0x182   : > { %1737 = vmatpush2.msra.mxu1 %v4427_v20  ;;  %1567 = vmatprep.subr.mxu0 %v4428_v19  ;;  %v4435_v19 = vld [vmem:[#allocation105_spill] sm:$0xff] }
 0x183   : > { %1745 = vmatmul.mubr.f32.vlgmr.msra.gmra.mxu1 %v4429_v21  ;;  %2037 = vmatprep.subr.mxu1 %v4430_v36  ;;  %v4436_v21 = vand.u32 4294901760, %v3548_v16  ;;  %v4437_v36 = vld [vmem:[#allocation106_spill] sm:$0xff] }
 0x184   : > { %1570 = vmatpush2.msra.mxu0 %v4431_v34  ;;  %1753 = vmatprep.mubr.f32.mxu1 %v4432_v9 }
 0x185   : > { %2039 = vmatpush1.msra.mxu1 %v2743_v22  ;;  %1573 = vmatprep.subr.mxu0 %v4433_v0  ;;  %v4438_v22 = vld [vmem:[#allocation109_spill] sm:$0xff] }
 0x186   : > { %2041 = vmatprep.subr.mxu1 %v2786_v52  ;;  %1576 = vmatpush2.msra.mxu0 %v4434_v50  ;;  %v4439_v52 = vld [vmem:[#allocation110_spill] sm:$0xff] }
 0x187   : > { %2043 = vmatpush1.msra.mxu1 %v2788_v53  ;;  %1579 = vmatprep.subr.mxu0 %v4435_v19  ;;  %v4440_v53 = vld [vmem:[#allocation13_spill] sm:$0xff] }
 0x188   : > { %1757 = vmatmul.mubr.f32.gmra.mxu1 %v4436_v21  ;;  %2045 = vmatprep.subr.mxu1 %v2790_v54  ;;  %v4441_v9 = vand.u32 4294901760, %v4440_v53  ;;  %v4442_v54 = vand.u32 4294901760, %v2761_v30  ;;  %v4446_v30 = vand.u32 4294901760, %v4347_v23  ;;  %v4475_v23 = vld [vmem:[#allocation46_spill] sm:$0xff]  ;;  %v4493_v53 = vld [vmem:[#allocation60_spill] sm:$0xff] }
 0x189   : > { %1582 = vmatpush2.msra.mxu0 %v4437_v36  ;;  %2047 = vmatpush1.msra.mxu1 %v2797_v59  ;;  %v4443_v59 = vand.u32 4294901760, %v2800_v60  ;;  %v4447_v60 = vand.u32 4294901760, %v4348_v29  ;;  %v4476_v29 = vld [vmem:[#allocation39_spill] sm:$0xff] }
 0x18a   : > { %2165 = vmatprep.mubr.f32.mxu1 %v3539_v49  ;;  %1585 = vmatprep.subr.mxu0 %v4438_v22 }
 0x18b   : > { %2049 = vmatprep.subr.mxu1 %v2808_v63  ;;  %1588 = vmatpush2.msra.mxu0 %v4439_v52  ;;  %v4444_v63 = vand.u32 4294901760, %v4344_v47 }
 0x18c   : > { %2051 = vmatpush1.msra.mxu1 %v2814_v2  ;;  %1594 = vmatmul.mubr.f32.vlgmr.msra.gmra.mxu0 %v3537_v31  ;;  %v4445_v2 = vand.u32 4294901760, %v4346_v58 }
 0x18d   : > { %1766 = vmatprep.subr.mxu0 %v4441_v9  ;;  %2053 = vmatprep.subr.mxu1 %v2816_v3  ;;  %v4448_v3 = vand.u32 4294901760, %v4349_v45  ;;  %v4477_v45 = vand.u32 4294901760, %v4476_v29  ;;  %v4494_v9 = vld [vmem:[#allocation49_spill] sm:$0xff]  ;;  %v4529_v29 = vld [vmem:[#allocation84_spill] sm:$0xff] }
 0x18e   : > { %1601 = vmatprep.mubr.f32.mxu0 %v3558_v8  ;;  %1770 = vmatpush1.msra.mxu0 %v4442_v54  ;;  %v4469_v8 = vld [vmem:[#allocation44_spill] sm:$0xff]  ;;  %v4495_v54 = vand.u32 4294901760, %v4494_v9 }
 0x18f   : > { %2055 = vmatpush1.msra.mxu1 %v2818_v7  ;;  %1774 = vmatprep.subr.mxu0 %v4443_v59  ;;  %v4449_v7 = vand.u32 4294901760, %v4350_v1  ;;  %v4478_v1 = vld [vmem:[#allocation51_spill] sm:$0xff]  ;;  %v4496_v59 = vld [vmem:[#allocation62_spill] sm:$0xff]  ;;  %v4547_v9 = vld [vmem:[#allocation96_spill] sm:$0xff] }
 0x190   : > { %2057 = vmatprep.subr.mxu1 %v2881_v55  ;;  %1778 = vmatpush1.msra.mxu0 %v4444_v63  ;;  %v4450_v55 = vand.u32 4294901760, %v4351_v48  ;;  %v4479_v48 = vld [vmem:[#allocation40_spill] sm:$0xff]  ;;  %v4497_v63 = vld [vmem:[#allocation50_spill] sm:$0xff] }
 0x191   : > { %2059 = vmatpush1.msra.mxu1 %v4345_v42  ;;  %1604 = vmatmul.mubr.f32.gmra.mxu0 %v3548_v16  ;;  %v4472_v42 = vld [vmem:[#allocation45_spill] sm:$0xff] }
 0x192   : > { %1782 = vmatprep.subr.mxu0 %v4445_v2  ;;  %2061 = vmatprep.subr.mxu1 %v2885_v57  ;;  %v4453_v57 = vand.u32 4294901760, %v4354_v12  ;;  %v4482_v12 = vld [vmem:[#allocation41_spill] sm:$0xff]  ;;  %v4498_v2 = vand.u32 4294901760, %v4497_v63  ;;  %v4550_v63 = vld [vmem:[#allocation98_spill] sm:$0xff] }
 0x193   : > { %1786 = vmatpush1.msra.mxu0 %v4446_v30  ;;  %2020 = vmatprep.mubr.f32.mxu0 %v3539_v49  ;;  %v4466_v49 = vld [vmem:[#allocation42_spill] sm:$0xff]  ;;  %v4499_v30 = vld [vmem:[#allocation64_spill] sm:$0xff] }
 0x194   : > { %2063 = vmatpush1.msra.mxu1 %v2905_v37  ;;  %1790 = vmatprep.subr.mxu0 %v4447_v60  ;;  %v4451_v37 = vand.u32 4294901760, %v4352_v15  ;;  %v4480_v15 = vand.u32 4294901760, %v4479_v48  ;;  %v4500_v60 = vld [vmem:[#allocation55_spill] sm:$0xff]  ;;  %v4532_v48 = vld [vmem:[#allocation86_spill] sm:$0xff] }
 0x195   : > { %2065 = vmatprep.subr.mxu1 %v2919_v35  ;;  %1794 = vmatpush1.msra.mxu0 %v4448_v3  ;;  %v4452_v35 = vand.u32 4294901760, %v4353_v62  ;;  %v4481_v62 = vld [vmem:[#allocation52_spill] sm:$0xff]  ;;  %v4501_v3 = vand.u32 4294901760, %v4500_v60  ;;  %v4553_v60 = vld [vmem:[#allocation89_spill] sm:$0xff] }
 0x196   : > { %2067 = vmatpush1.msra.mxu1 %v2927_v24  ;;  %1798 = vmatprep.subr.mxu0 %v4449_v7  ;;  %v4454_v24 = vand.u32 4294901760, %v4355_v17  ;;  %v4483_v17 = vand.u32 4294901760, %v4482_v12  ;;  %v4502_v7 = vld [vmem:[#allocation66_spill] sm:$0xff]  ;;  %v4535_v12 = vld [vmem:[#allocation88_spill] sm:$0xff] }
 0x197   : > { %2069 = vmatprep.subr.mxu1 %v2929_v32  ;;  %1802 = vmatpush1.msra.mxu0 %v4450_v55  ;;  %v4455_v32 = vand.u32 4294901760, %v4356_v11  ;;  %v4484_v11 = vld [vmem:[#allocation53_spill] sm:$0xff]  ;;  %v4503_v55 = vld [vmem:[#allocation56_spill] sm:$0xff] }
 0x198   : > { %2071 = vmatpush1.msra.mxu1 %v2931_v40  ;;  %1806 = vmatprep.subr.mxu0 %v4451_v37  ;;  %v4456_v40 = vand.u32 4294901760, %v4357_v41  ;;  %v4485_v41 = vld [vmem:[#allocation43_spill] sm:$0xff]  ;;  %v4504_v37 = vand.u32 4294901760, %v4503_v55  ;;  %v4556_v55 = vld [vmem:[#allocation90_spill] sm:$0xff] }
 0x199   : > { %2073 = vmatprep.subr.mxu1 %v3003_v26  ;;  %1810 = vmatpush1.msra.mxu0 %v4452_v35  ;;  %v4457_v26 = vand.u32 4294901760, %v4358_v18  ;;  %v4486_v18 = vand.u32 4294901760, %v4485_v41  ;;  %v4505_v35 = vld [vmem:[#allocation68_spill] sm:$0xff]  ;;  %v4538_v41 = vld [vmem:[#allocation91_spill] sm:$0xff] }
 0x19a   : > { %2075 = vmatpush1.msra.mxu1 %v3005_v44  ;;  %1814 = vmatprep.subr.mxu0 %v4453_v57  ;;  %v4460_v44 = vand.u32 4294901760, %v4361_v27  ;;  %v4506_v57 = vld [vmem:[#allocation57_spill] sm:$0xff] }
 0x19b   : > { %2077 = vmatprep.subr.mxu1 %v3007_v28  ;;  %1818 = vmatpush1.msra.mxu0 %v4454_v24  ;;  %v4458_v28 = vand.u32 4294901760, %v4359_v6  ;;  %v4487_v6 = vld [vmem:[#allocation54_spill] sm:$0xff]  ;;  %v4507_v24 = vand.u32 4294901760, %v4506_v57 }
 0x19c   : > { %2079 = vmatpush1.msra.mxu1 %v3027_v33  ;;  %1822 = vmatprep.subr.mxu0 %v4455_v32  ;;  %v4459_v33 = vand.u32 4294901760, %v4360_v46  ;;  %v4488_v46 = vld [vmem:[#allocation47_spill] sm:$0xff]  ;;  %v4508_v32 = vld [vmem:[#allocation70_spill] sm:$0xff] }
 0x19d   : > { %2081 = vmatprep.subr.mxu1 %v3039_v43  ;;  %1826 = vmatpush1.msra.mxu0 %v4456_v40  ;;  %v4461_v43 = vand.u32 4294901760, %v4362_v25  ;;  %v4489_v27 = vand.u32 4294901760, %v4488_v46  ;;  %v4490_v25 = vld [vmem:[#allocation59_spill] sm:$0xff]  ;;  %v4509_v40 = vld [vmem:[#allocation58_spill] sm:$0xff]  ;;  %v4541_v46 = vld [vmem:[#allocation92_spill] sm:$0xff] }
 0x19e   : > { %2083 = vmatpush1.msra.mxu1 %v3045_v14  ;;  %1830 = vmatprep.subr.mxu0 %v4457_v26  ;;  %v4462_v14 = vand.u32 4294901760, %v4363_v61  ;;  %v4491_v61 = vld [vmem:[#allocation48_spill] sm:$0xff]  ;;  %v4510_v26 = vand.u32 4294901760, %v4509_v40 }
 0x19f   : > { %2085 = vmatprep.subr.mxu1 %v3047_v51  ;;  %1834 = vmatpush1.msra.mxu0 %v4458_v28  ;;  %v4463_v51 = vld [vmem:[#allocation38_spill] sm:$0xff]  ;;  %v4492_v21 = vand.u32 4294901760, %v4491_v61  ;;  %v4511_v28 = vld [vmem:[#allocation72_spill] sm:$0xff] }
 0x1a0   : > { %2087 = vmatpush1.msra.mxu1 %v3049_v5  ;;  %1838 = vmatprep.subr.mxu0 %v4459_v33  ;;  %v4464_v5 = vld [vmem:[#allocation34_spill] sm:$0xff]  ;;  %v4512_v33 = vld [vmem:[#allocation61_spill] sm:$0xff] }
 0x1a1   : > { %2089 = vmatprep.subr.mxu1 %v3115_v38  ;;  %1842 = vmatpush1.msra.mxu0 %v4460_v44  ;;  %v4465_v31 = vand.u32 4294901760, %v4464_v5  ;;  %v4467_v38 = vld [vmem:[#allocation35_spill] sm:$0xff]  ;;  %v4513_v44 = vand.u32 4294901760, %v4512_v33  ;;  %v4517_v5 = vld [vmem:[#allocation76_spill] sm:$0xff]  ;;  %v4544_v61 = vld [vmem:[#allocation94_spill] sm:$0xff] }
 0x1a2   : > { %2091 = vmatpush1.msra.mxu1 %v3117_v10  ;;  %1846 = vmatprep.subr.mxu0 %v4461_v43  ;;  %v4468_v16 = vand.u32 4294901760, %v4467_v38  ;;  %v4470_v10 = vld [vmem:[#allocation36_spill] sm:$0xff]  ;;  %v4514_v43 = vld [vmem:[#allocation75_spill] sm:$0xff]  ;;  %v4520_v38 = vld [vmem:[#allocation78_spill] sm:$0xff] }
 0x1a3   : > { %2093 = vmatprep.subr.mxu1 %v3119_v39  ;;  %1850 = vmatpush1.msra.mxu0 %v4462_v14  ;;  %v4471_v47 = vand.u32 4294901760, %v4470_v10  ;;  %v4473_v39 = vld [vmem:[#allocation37_spill] sm:$0xff]  ;;  %v4515_v14 = vld [vmem:[#allocation63_spill] sm:$0xff]  ;;  %v4523_v10 = vld [vmem:[#allocation80_spill] sm:$0xff] }
 0x1a4   : > { %2095 = vmatpush1.msra.mxu1 %v4463_v51  ;;  %1854 = vmatprep.subr.mxu0 %v4465_v31  ;;  %v4474_v58 = vand.u32 4294901760, %v4473_v39  ;;  %v4516_v51 = vand.u32 4294901760, %v4515_v14  ;;  %v4518_v31 = vld [vmem:[#allocation65_spill] sm:$0xff]  ;;  %v4526_v39 = vld [vmem:[#allocation82_spill] sm:$0xff]  ;;  %v4572_v14 = vand.u32 4294901760, %v4438_v22 }
 0x1a5   : > { %2097 = vmatprep.subr.mxu1 %v4466_v49  ;;  %1858 = vmatpush1.msra.mxu0 %v4468_v16  ;;  %v4519_v49 = vand.u32 4294901760, %v4518_v31  ;;  %v4521_v16 = vld [vmem:[#allocation67_spill] sm:$0xff]  ;;  %v4566_v33 = vld [vmem:[#allocation113_spill] sm:$0xff] }
 0x1a6   : > { %2099 = vmatpush1.msra.mxu1 %v4469_v8  ;;  %1862 = vmatprep.subr.mxu0 %v4471_v47  ;;  %v4522_v8 = vand.u32 4294901760, %v4521_v16  ;;  %v4524_v47 = vld [vmem:[#allocation69_spill] sm:$0xff] }
 0x1a7   : > { %2101 = vmatprep.subr.mxu1 %v4472_v42  ;;  %1866 = vmatpush1.msra.mxu0 %v4474_v58  ;;  %v4525_v42 = vand.u32 4294901760, %v4524_v47  ;;  %v4527_v58 = vld [vmem:[#allocation71_spill] sm:$0xff] }
 0x1a8   : > { %2103 = vmatpush2.msra.mxu1 %v4475_v23  ;;  %1870 = vmatprep.subr.mxu0 %v4477_v45  ;;  %v4528_v23 = vand.u32 4294901760, %v4527_v58  ;;  %v4530_v45 = vld [vmem:[#allocation73_spill] sm:$0xff] }
 0x1a9   : > { %2105 = vmatprep.subr.mxu1 %v4478_v1  ;;  %1874 = vmatpush1.msra.mxu0 %v4480_v15  ;;  %v4531_v1 = vand.u32 4294901760, %v4530_v45  ;;  %v4533_v15 = vld [vmem:[#allocation74_spill] sm:$0xff] }
 0x1aa   : > { %2107 = vmatpush2.msra.mxu1 %v4481_v62  ;;  %1878 = vmatprep.subr.mxu0 %v4483_v17  ;;  %v4534_v62 = vand.u32 4294901760, %v4533_v15  ;;  %v4536_v17 = vld [vmem:[#allocation77_spill] sm:$0xff] }
 0x1ab   : > { %2109 = vmatprep.subr.mxu1 %v4484_v11  ;;  %1882 = vmatpush1.msra.mxu0 %v4486_v18  ;;  %v4537_v11 = vand.u32 4294901760, %v4536_v17  ;;  %v4539_v18 = vld [vmem:[#allocation79_spill] sm:$0xff] }
 0x1ac   : > { %2111 = vmatpush2.msra.mxu1 %v4487_v6  ;;  %1886 = vmatprep.subr.mxu0 %v4489_v27  ;;  %v4540_v6 = vand.u32 4294901760, %v4539_v18  ;;  %v4542_v27 = vld [vmem:[#allocation81_spill] sm:$0xff] }
 0x1ad   : > { %2113 = vmatprep.subr.mxu1 %v4490_v25  ;;  %1890 = vmatpush1.msra.mxu0 %v4492_v21  ;;  %v4543_v25 = vand.u32 4294901760, %v4542_v27  ;;  %v4545_v21 = vld [vmem:[#allocation83_spill] sm:$0xff] }
 0x1ae   : > { %2115 = vmatpush2.msra.mxu1 %v4493_v53  ;;  %1894 = vmatprep.subr.mxu0 %v4495_v54  ;;  %v4546_v53 = vand.u32 4294901760, %v4545_v21  ;;  %v4548_v54 = vld [vmem:[#allocation85_spill] sm:$0xff] }
 0x1af   : > { %2117 = vmatprep.subr.mxu1 %v4496_v59  ;;  %1898 = vmatpush2.msra.mxu0 %v4498_v2  ;;  %v4549_v59 = vand.u32 4294901760, %v4548_v54  ;;  %v4551_v2 = vand.u32 4294901760, %v4418_v13 }
 0x1b0   : > { %2119 = vmatpush2.msra.mxu1 %v4499_v30  ;;  %1902 = vmatprep.subr.mxu0 %v4501_v3  ;;  %v4552_v30 = vld [vmem:[#allocation100_spill] sm:$0xff]  ;;  %v4554_v3 = vand.u32 4294901760, %v4553_v60 }
 0x1b1   : > { %2121 = vmatprep.subr.mxu1 %v4502_v7  ;;  %1906 = vmatpush2.msra.mxu0 %v4504_v37  ;;  %v4555_v7 = vld [vmem:[#allocation102_spill] sm:$0xff]  ;;  %v4557_v37 = vand.u32 4294901760, %v4556_v55 }
 0x1b2   : > { %2123 = vmatpush2.msra.mxu1 %v4505_v35  ;;  %1910 = vmatprep.subr.mxu0 %v4507_v24  ;;  %v4558_v35 = vld [vmem:[#allocation93_spill] sm:$0xff]  ;;  %v4560_v24 = vld [vmem:[#allocation95_spill] sm:$0xff] }
 0x1b3   : > { %2125 = vmatprep.subr.mxu1 %v4508_v32  ;;  %1914 = vmatpush2.msra.mxu0 %v4510_v26  ;;  %v4559_v57 = vand.u32 4294901760, %v4558_v35  ;;  %v4561_v13 = vand.u32 4294901760, %v4560_v24  ;;  %v4562_v32 = vld [vmem:[#allocation97_spill] sm:$0xff]  ;;  %v4564_v26 = vld [vmem:[#allocation111_spill] sm:$0xff] }
 0x1b4   : > { %2127 = vmatpush2.msra.mxu1 %v4511_v28  ;;  %1918 = vmatprep.subr.mxu0 %v4513_v44  ;;  %v4563_v40 = vand.u32 4294901760, %v4562_v32  ;;  %v4565_v28 = vand.u32 4294901760, %v4431_v34  ;;  %v4569_v44 = vand.u32 4294901760, %v4435_v19  ;;  %v4573_v34 = vand.u32 4294901760, %v4439_v52 }
 0x1b5   : > { %2129 = vmatprep.subr.mxu1 %v4514_v43  ;;  %1922 = vmatpush2.msra.mxu0 %v4516_v51  ;;  %v4571_v43 = vand.u32 4294901760, %v4437_v36 }
 0x1b6   : > { %2131 = vmatpush2.msra.mxu1 %v4517_v5  ;;  %1926 = vmatprep.subr.mxu0 %v4519_v49 }
 0x1b7   : > { %2133 = vmatprep.subr.mxu1 %v4520_v38  ;;  %1930 = vmatpush2.msra.mxu0 %v4522_v8 }
 0x1b8   : > { %2135 = vmatpush2.msra.mxu1 %v4523_v10  ;;  %1934 = vmatprep.subr.mxu0 %v4525_v42 }
 0x1b9   : > { %2137 = vmatprep.subr.mxu1 %v4526_v39  ;;  %1938 = vmatpush2.msra.mxu0 %v4528_v23 }
 0x1ba   : > { %2139 = vmatpush2.msra.mxu1 %v4529_v29  ;;  %1942 = vmatprep.subr.mxu0 %v4531_v1 }
 0x1bb   : > { %2141 = vmatprep.subr.mxu1 %v4532_v48  ;;  %1946 = vmatpush2.msra.mxu0 %v4534_v62 }
 0x1bc   : > { %2143 = vmatpush2.msra.mxu1 %v4535_v12  ;;  %1950 = vmatprep.subr.mxu0 %v4537_v11 }
 0x1bd   : > { %2145 = vmatprep.subr.mxu1 %v4538_v41  ;;  %1954 = vmatpush2.msra.mxu0 %v4540_v6 }
 0x1be   : > { %2147 = vmatpush2.msra.mxu1 %v4541_v46  ;;  %1958 = vmatprep.subr.mxu0 %v4543_v25 }
 0x1bf   : > { %2149 = vmatprep.subr.mxu1 %v4544_v61  ;;  %1962 = vmatpush2.msra.mxu0 %v4546_v53 }
 0x1c0   : > { %2151 = vmatpush2.msra.mxu1 %v4547_v9  ;;  %1966 = vmatprep.subr.mxu0 %v4549_v59 }
 0x1c1   : > { %2153 = vmatprep.subr.mxu1 %v4550_v63  ;;  %1970 = vmatpush2.msra.mxu0 %v4551_v2 }
 0x1c2   : > { %2155 = vmatpush2.msra.mxu1 %v4552_v30  ;;  %1974 = vmatprep.subr.mxu0 %v4554_v3 }
 0x1c3   : > { %2157 = vmatprep.subr.mxu1 %v4555_v7  ;;  %1978 = vmatpush2.msra.mxu0 %v4557_v37 }
 0x1c4   : > { %2159 = vmatpush2.msra.mxu1 %v4423_v56  ;;  %1982 = vmatprep.subr.mxu0 %v4559_v57  ;;  %v4567_v56 = vand.u32 4294901760, %v4433_v0 }
 0x1c5   : > { %2161 = vmatprep.subr.mxu1 %v4425_v4  ;;  %1986 = vmatpush2.msra.mxu0 %v4561_v13  ;;  %v4568_v4 = vand.u32 4294901760, %v4434_v50 }
 0x1c6   : > { %2163 = vmatpush2.msra.mxu1 %v4427_v20  ;;  %1990 = vmatprep.subr.mxu0 %v4563_v40  ;;  %v4570_v20 = vld [vmem:[#allocation112_spill] sm:$0xff] }
 0x1c7   : > { %2167 = vmatmul.mubr.f32.vlgmr.msra.gmra.mxu1 %v4564_v26  ;;  %1994 = vmatpush2.msra.mxu0 %v4565_v28 }
 0x1c8   : > { %2173 = vmatprep.mubr.f32.mxu1 %v4566_v33  ;;  %1998 = vmatprep.subr.mxu0 %v4567_v56 }
 0x1c9   : > { %2002 = vmatpush2.msra.mxu0 %v4568_v4 }
 0x1ca   : > { %2006 = vmatprep.subr.mxu0 %v4569_v44 }
 0x1cb   : > { %2175 = vmatmul.mubr.f32.gmra.mxu1 %v4570_v20  ;;  %2010 = vmatpush2.msra.mxu0 %v4571_v43 }
 0x1cc   : > { %2014 = vmatprep.subr.mxu0 %v4572_v14 }
 0x1cd   : > { %2018 = vmatpush2.msra.mxu0 %v4573_v34 }
 0x1ce   : > { %2022 = vmatmul.mubr.f32.vlgmr.msra.gmra.mxu0 %v4564_v26 }
 0x1cf   : > { %2028 = vmatprep.mubr.f32.mxu0 %v4566_v33 }
 0x1d2   : > { %2030 = vmatmul.mubr.f32.gmra.mxu0 %v4570_v20 }
 0x201   : > { %v1384_v0 = vpop.f32.mrf.mxu1 }
 0x203   : > { %v1386_v50 = vpop.f32.mrf.mxu1 }
 0x205   : > { %v1392_v51 = vpop.f32.mrf.mxu1 }
 0x207   : > { %v1394_v31 = vpop.f32.mrf.mxu1 }
 0x209   : > { %v975_v19 = vpop.f32.mrf.mxu0 }
 0x20a   : > { %v1385_v10 = vadd.f32 %v1384_v0, %v975_v19 }
 0x20b   : > { %v977_v5 = vpop.f32.mrf.mxu0 }
 0x20c   : > { %v1387_v39 = vadd.f32 %v1386_v50, %v977_v5 }
 0x20e   : > { %v991_v36 = vpop.f32.mrf.mxu0 }
 0x20f   : > { %v1393_v29 = vadd.f32 %v1392_v51, %v991_v36 }
 0x210   : > { %v993_v38 = vpop.f32.mrf.mxu0 }
 0x211   : > { %v1395_v48 = vadd.f32 %v1394_v31, %v993_v38 }
 0x243   : > { %v1746_v49 = vpop.f32.mrf.mxu1 }
 0x245   : > { %v1748_v22 = vpop.f32.mrf.mxu1 }
 0x248   : > { %v1758_v8 = vpop.f32.mrf.mxu1 }
 0x24a   : > { %v1760_v47 = vpop.f32.mrf.mxu1 }
 0x24c   : > { %v1595_v16 = vpop.f32.mrf.mxu0 }
 0x24d   : > { %v1596_v58 = vadd.f32 %v1595_v16, %v1385_v10 }
 0x24e   : > { %v1597_v52 = vpop.f32.mrf.mxu0 }
 0x24f   : > { %v1598_v45 = vadd.f32 %v1597_v52, %v1387_v39  ;;  %v1747_v62 = vadd.f32 %v1746_v49, %v1596_v58 }
 0x251   : > { %v1605_v42 = vpop.f32.mrf.mxu0  ;;  %v1749_v18 = vadd.f32 %v1748_v22, %v1598_v45 }
 0x252   : > { %v1606_v15 = vadd.f32 %v1605_v42, %v1393_v29 }
 0x253   : > { %v1607_v1 = vpop.f32.mrf.mxu0 }
 0x254   : > { %v1608_v11 = vadd.f32 %v1607_v1, %v1395_v48  ;;  %v1759_v25 = vadd.f32 %v1758_v8, %v1606_v15 }
 0x256   : > { %v1761_v54 = vadd.f32 %v1760_v47, %v1608_v11 }
 0x287   : > { %v2168_v23 = vpop.f32.mrf.mxu1 }
 0x289   : > { %v2170_v12 = vpop.f32.mrf.mxu1 }
 0x28b   : > { %v2176_v61 = vpop.f32.mrf.mxu1 }
 0x28d   : > { %v2178_v30 = vpop.f32.mrf.mxu1 }
 0x28e   : > { %v2023_v17 = vpop.f32.mrf.mxu0 }
 0x28f   : > { %v2024_v41 = vadd.f32 %v2023_v17, %v1747_v62 }
 0x290   : > { %v2025_v6 = vpop.f32.mrf.mxu0 }
 0x291   : > { %v2169_v46 = vadd.f32 %v2168_v23, %v2024_v41  ;;  %v2026_v27 = vadd.f32 %v2025_v6, %v1749_v18 }
 0x292   : > { %v2031_v21 = vpop.f32.mrf.mxu0 }
 0x293   : > { %2181 = vst [vmem:[%s217_s18] sm:$0xff] %v2169_v46  ;;  %v2171_v53 = vadd.f32 %v2170_v12, %v2026_v27  ;;  %v2032_v9 = vadd.f32 %v2031_v21, %v1759_v25 }
 0x294   : > { %v2033_v59 = vpop.f32.mrf.mxu0 }
 0x295   : > { %2182 = vst [vmem:[%s217_s18 + $0x8] sm:$0xff] %v2171_v53  ;;  %v2177_v63 = vadd.f32 %v2176_v61, %v2032_v9  ;;  %v2034_v2 = vadd.f32 %v2033_v59, %v1761_v54 }
 0x297   : > { %2183 = vst [vmem:[%s217_s18 + $0x10] sm:$0xff] %v2177_v63  ;;  %v2179_v60 = vadd.f32 %v2178_v30, %v2034_v2 }
 0x299   : > { %2184 = vst [vmem:[%s217_s18 + $0x18] sm:$0xff] %v2179_v60 }
 0x29a   : > { %2478 = shalt.err (!%p2475_p9)
}
 0x29b   : > { %s2479_s22 = scalar_lea.hbm %s3911_s29, 512  ;;  %s2483_s28 = scalar_lea.hbm %s3957_s3, 1024 }
 0x29c   : > { %p2480_p13 = scmp.ne.s32.totalorder %s3911_s29, %s2479_s22  ;;  %p2484_p4 = scmp.lt.s32.totalorder %s3911_s29, %s3957_s3 }
 0x29d   : > { %p2485_p8 = scmp.lt.s32.totalorder %s2483_s28, %s2479_s22 }
 0x29e   : > { %p2481_p5 = pnand %p2480_p13, %p4574_p10 }
 0x29f   : > { %p2486_p7 = por %p2485_p8, %p2484_p4 }
 0x2a0   : > { %p2482_p0 = pneg %p2481_p5 }
 0x2a2   : > { %p2487_p11 = pnand %p2486_p7, %p2482_p0 }
 0x2a4   : > { %2490 = shalt.err (!%p2487_p11)
}
 0x2a5   : > { %s2544_s30 = smov 256   ;;  %s2545_s18 = smov 16  }
 0x2a6   : > { %2321 = dma.vmem_to_hbm [thread:$0]  (%p4574_p10), %s3906_s20, 512, %s3911_s29, %s2186_s4, %s2544_s30, %s2544_s30, %s2545_s18  }
 0x2a7 PF: > { %s2214_s5 = sand.u32 1, %s2521_s12   ;;  %p4575_p1 = scmp.ne.s32.totalorder %s4202_s19, 0 }
 0x2a8   : > { %p4576_p2 = scmp.ge.s32.totalorder %s2533_s15, 2  ;;  %s2215_s6 = scalar_lea.sflag [#allocation4], %s2214_s5 }
 0x2aa   : > { %p2335_p6 = pnand %p4576_p2, %p4575_p1 }
 0x2ac   : > { %p2336_p12 = pneg %p2335_p6 }
 0x2ae   : > { %2516 = dma.done.wait (%p2336_p12), %s2215_s6, 512  }
 0x2af   : > { %2518 = vsyncadd (%p2336_p12), %s2215_s6, 4294966784  ;;  %p17_p3 = scmp.ge.s32.totalorder %s2641_s9, 4   ;;  %s4577_s12 = smov %s2525_s13 }
 0x2b0   : > { %s4578_s13 = smov %s2529_s14  ;;  %s4579_s14 = smov %s2650_s17 }
 0x2b1   : > { %s4580_s15 = smov %s2641_s9  ;;  %19 = sbr.rel (!%p17_p3) target bundleno = 6 (0x6), region = 85 }
 0x2b6   :  { %2220 = vsyncpa [#allocation3], 1 }
 0x2b7   :  { %2222 = vsyncpa [#allocation3 + $0x1], 1 }
 0x2b8   :  { %2223 = vsyncpa [#allocation6], 1 }
 0x2b9   :  { %2224 = vsyncpa [#allocation4], 1 }
 0x2ba   :  { %2226 = vsyncpa [#allocation4 + $0x1], 1 }

</bundles_post_ra>
